<compile_context>
chip_gen: v7x
topology: tpu7x:2x2x1
jax: 0.10.0
libtpu: 0.0.40
codegen_flags: <defaults>
</compile_context>

<pallas_src>
import functools

import jax
import jax.numpy as jnp
from jax import lax
from jax.experimental import pallas as pl
from jax.experimental.pallas import tpu as pltpu


# bf16 operands on the MXU (f32 accumulation); flip to float32 for bit-closer
# numerics vs the PyTorch f32 reference.
MXU_DTYPE = jnp.bfloat16
# Inter-layer conv activations are stored in bf16 (final fc output stays f32).
ACT_DTYPE = jnp.bfloat16

_M_ALIGN = 16                      # sublane alignment, safe for bf16 packing
_VMEM_LIMIT = 48 * 1024 * 1024     # > v5e's 16 MiB default, < v7x 64 MiB phys


# ----------------------------------------------------------------------------
# small helpers
# ----------------------------------------------------------------------------
def _round_up(x, m):
    return ((x + m - 1) // m) * m


def _pad_axis(a, axis, new_size):
    pad = new_size - a.shape[axis]
    if pad == 0:
        return a
    widths = [(0, 0)] * a.ndim
    widths[axis] = (0, pad)
    return jnp.pad(a, widths)


# ----------------------------------------------------------------------------
# Pallas kernel 1: grouped, M-tiled matmul + bias (+ optional ReLU).
# Grid cell (g, i) computes o[g, i*bm:(i+1)*bm, :] = act(x_tile @ w_g + b_g).
# ----------------------------------------------------------------------------
def _matmul_bias_kernel(x_ref, w_ref, b_ref, o_ref, *, apply_relu):
    acc = jnp.dot(x_ref[...], w_ref[...], preferred_element_type=jnp.float32)
    acc = acc + b_ref[...]                     # b is (1, N) f32, broadcasts
    if apply_relu:
        acc = jnp.maximum(acc, 0.0)
    o_ref[...] = acc.astype(o_ref.dtype)


def grouped_matmul_bias(x, w, b, *, apply_relu, out_dtype=jnp.float32,
                        block_m=1024, x_layout="grouped"):
    """Grouped matmul + bias (+ReLU) on the MXU.

    x_layout == "grouped": x is [G, M, K]                 -> out [G, M, N]
    x_layout == "k_split": x is [M, G*K] (group-major K)  -> out [G, M, N]
                           (group g reads K columns [g*K, (g+1)*K); avoids any
                            HBM reshuffle of a fused multi-network activation)
    w: [G, K, N], b: [G, N].
    """
    G, K, N = w.shape
    if x_layout == "grouped":
        assert x.shape[0] == G and x.shape[2] == K, (x.shape, w.shape)
        M = x.shape[1]
    else:
        assert x.ndim == 2 and x.shape[1] == G * K, (x.shape, w.shape)
        assert K % 128 == 0, "k_split layout needs per-group K % 128 == 0"
        M = x.shape[0]

    Mp = _round_up(M, _M_ALIGN)
    bm = min(block_m, Mp)
    Mp = _round_up(Mp, bm)                     # tile divides padded M exactly
    Np = _round_up(N, 128)                     # lane-dense output stores

    wp = _pad_axis(w, 2, Np).astype(MXU_DTYPE)
    bp = _pad_axis(b.reshape(G, 1, N).astype(jnp.float32), 2, Np)

    if x_layout == "grouped":
        xp = _pad_axis(x, 1, Mp).astype(MXU_DTYPE)
        x_spec = pl.BlockSpec((None, bm, K), lambda g, i: (g, i, 0))
    else:
        xp = _pad_axis(x, 0, Mp).astype(MXU_DTYPE)
        x_spec = pl.BlockSpec((bm, K), lambda g, i: (i, g))

    itemsize = jnp.dtype(MXU_DTYPE).itemsize
    cost = pl.CostEstimate(
        flops=2 * G * Mp * K * Np,
        transcendentals=0,
        bytes_accessed=(G * Mp * K + G * K * Np) * itemsize
        + G * Np * 4 + G * Mp * Np * jnp.dtype(out_dtype).itemsize,
    )

    kernel = functools.partial(_matmul_bias_kernel, apply_relu=apply_relu)
    out = pl.pallas_call(
        kernel,
        out_shape=jax.ShapeDtypeStruct((G, Mp, Np), out_dtype),
        grid=(G, Mp // bm),
        in_specs=[
            x_spec,
            pl.BlockSpec((None, K, Np), lambda g, i: (g, 0, 0)),
            pl.BlockSpec((None, 1, Np), lambda g, i: (g, 0, 0)),
        ],
        out_specs=pl.BlockSpec((None, bm, Np), lambda g, i: (g, i, 0)),
        compiler_params=pltpu.CompilerParams(
            dimension_semantics=("parallel", "parallel"),
            vmem_limit_bytes=_VMEM_LIMIT),
        cost_estimate=cost,
    )(xp, wp, bp)
    return out[:, :M, :N]


# ----------------------------------------------------------------------------
# Pallas kernel 2: fused Linear -> ReLU -> Linear (hidden stays on-chip).
# NOTE: the hidden activation is downcast to MXU_DTYPE (bf16) before the
# second matmul — intentional numerics deviation from the f32 reference.
# ----------------------------------------------------------------------------
def _fc_fused_kernel(x_ref, w1_ref, b1_ref, w2_ref, b2_ref, o_ref):
    h = jnp.dot(x_ref[...], w1_ref[...], preferred_element_type=jnp.float32)
    h = jnp.maximum(h + b1_ref[...], 0.0)
    out = jnp.dot(h.astype(w2_ref.dtype), w2_ref[...],
                  preferred_element_type=jnp.float32)
    o_ref[...] = (out + b2_ref[...]).astype(o_ref.dtype)


def grouped_fc_fused(x, w1, b1, w2, b2, *, block_m=256):
    """x: [G, M, K1]; w1: [G, K1, N1]; w2: [G, N1, N2] -> [G, M, N2] f32."""
    G, M, K1 = x.shape
    N1 = w1.shape[2]
    N2 = w2.shape[2]
    assert N1 % 128 == 0 and N2 % 128 == 0, (N1, N2)

    Mp = _round_up(M, _M_ALIGN)
    bm = min(block_m, Mp)
    Mp = _round_up(Mp, bm)

    xp = _pad_axis(x, 1, Mp).astype(MXU_DTYPE)
    w1c = w1.astype(MXU_DTYPE)
    w2c = w2.astype(MXU_DTYPE)
    b1c = b1.reshape(G, 1, N1).astype(jnp.float32)
    b2c = b2.reshape(G, 1, N2).astype(jnp.float32)

    itemsize = jnp.dtype(MXU_DTYPE).itemsize
    cost = pl.CostEstimate(
        flops=2 * G * Mp * (K1 * N1 + N1 * N2),
        transcendentals=0,
        bytes_accessed=(G * Mp * K1 + G * K1 * N1 + G * N1 * N2) * itemsize
        + G * (N1 + N2) * 4 + G * Mp * N2 * 4,
    )

    out = pl.pallas_call(
        _fc_fused_kernel,
        out_shape=jax.ShapeDtypeStruct((G, Mp, N2), jnp.float32),
        grid=(G, Mp // bm),
        in_specs=[
            pl.BlockSpec((None, bm, K1), lambda g, i: (g, i, 0)),
            pl.BlockSpec((None, K1, N1), lambda g, i: (g, 0, 0)),
            pl.BlockSpec((None, 1, N1), lambda g, i: (g, 0, 0)),
            pl.BlockSpec((None, N1, N2), lambda g, i: (g, 0, 0)),
            pl.BlockSpec((None, 1, N2), lambda g, i: (g, 0, 0)),
        ],
        out_specs=pl.BlockSpec((None, bm, N2), lambda g, i: (g, i, 0)),
        compiler_params=pltpu.CompilerParams(
            dimension_semantics=("parallel", "parallel"),
            vmem_limit_bytes=_VMEM_LIMIT),
        cost_estimate=cost,
    )(xp, w1c, b1c, w2c, b2c)
    return out[:, :M, :]


# ----------------------------------------------------------------------------
# Glue: im2col as one XLA gather (single conv with an identity kernel).
# Output K ordering is channel-major: index = c*(kh*kw) + i*kw + j, which
# matches torch Conv2d weight.reshape(Cout, -1).T ordering.
# ----------------------------------------------------------------------------
def _im2col(x_nhwc, kh, kw, stride):
    B, H, W, C = x_nhwc.shape
    oh = (H - kh) // stride + 1
    ow = (W - kw) // stride + 1
    patches = lax.conv_general_dilated_patches(
        x_nhwc, (kh, kw), (stride, stride), "VALID",
        dimension_numbers=("NHWC", "HWIO", "NHWC"))
    return patches.reshape(B * oh * ow, C * kh * kw), oh, ow


# ----------------------------------------------------------------------------
# Parameter construction (deterministic, PyTorch-default-style uniform init).
# Conv weights stored as [Cin*kh*kw, Cout] with K ordered (Cin, kh, kw).
# ----------------------------------------------------------------------------
def _uniform(key, shape, fan_in):
    bound = 1.0 / jnp.sqrt(jnp.asarray(fan_in, jnp.float32))
    return jax.random.uniform(key, shape, jnp.float32, -bound, bound)


def _conv_out_spatial(h, w):
    # Conv2d(3,32,8,s=4) -> Conv2d(32,64,4,s=2) -> Conv2d(64,64,3,s=1)
    h, w = (h - 8) // 4 + 1, (w - 8) // 4 + 1
    h, w = (h - 4) // 2 + 1, (w - 4) // 2 + 1
    h, w = (h - 3) // 1 + 1, (w - 3) // 1 + 1
    return h, w


def build_network_params(key, input_shape):
    c_in, H, W = input_shape
    assert c_in == 3, "RNDModel conv stack expects 3 input channels"
    oh, ow = _conv_out_spatial(H, W)
    conv_out_size = 64 * oh * ow

    ks = jax.random.split(key, 10)
    params = {
        "c1_w": _uniform(ks[0], (3 * 8 * 8, 32), 3 * 8 * 8),
        "c1_b": _uniform(ks[1], (32,), 3 * 8 * 8),
        "c2_w": _uniform(ks[2], (32 * 4 * 4, 64), 32 * 4 * 4),
        "c2_b": _uniform(ks[3], (64,), 32 * 4 * 4),
        "c3_w": _uniform(ks[4], (64 * 3 * 3, 64), 64 * 3 * 3),
        "c3_b": _uniform(ks[5], (64,), 64 * 3 * 3),
        # linear weights stored as [in, out] (equivalent to torch W.T), fc1's
        # input axis ordered (c, h, w) to match the NCHW flatten below.
        "fc1_w": _uniform(ks[6], (conv_out_size, 512), conv_out_size),
        "fc1_b": _uniform(ks[7], (512,), conv_out_size),
        "fc2_w": _uniform(ks[8], (512, 512), 512),
        "fc2_b": _uniform(ks[9], (512,), 512),
    }
    return params


# ----------------------------------------------------------------------------
# RND forward: target (group 0) and predictor (group 1) run stacked.
# ----------------------------------------------------------------------------
def rnd_forward(target_params, predictor_params, x_nchw):
    B = x_nchw.shape[0]
    x = jnp.transpose(x_nchw, (0, 2, 3, 1)).astype(ACT_DTYPE)   # NHWC, bf16

    # --- conv1: both networks see the same input -> one im2col, weights
    #     concatenated along N (single pallas_call, lane-dense padded output).
    cols1, oh1, ow1 = _im2col(x, 8, 8, 4)                        # [M1, 192]
    w1 = jnp.concatenate([target_params["c1_w"], predictor_params["c1_w"]], 1)
    b1 = jnp.concatenate([target_params["c1_b"], predictor_params["c1_b"]], 0)
    y1 = grouped_matmul_bias(cols1[None], w1[None], b1[None],
                             apply_relu=True, out_dtype=ACT_DTYPE)[0]
    # channels 0:32 = target, 32:64 = predictor; kept fused (no transpose) —
    # conv2's K-split BlockSpec picks the right contiguous half of K per group.
    y1 = y1.reshape(B, oh1, ow1, 64)

    # --- conv2: im2col of the fused 64-channel activation; K is channel-major
    #     so group g's 512-wide slice of K is columns [g*512, (g+1)*512).
    cols2, oh2, ow2 = _im2col(y1, 4, 4, 2)                       # [M2, 1024]
    w2 = jnp.stack([target_params["c2_w"], predictor_params["c2_w"]], 0)
    b2 = jnp.stack([target_params["c2_b"], predictor_params["c2_b"]], 0)
    y2 = grouped_matmul_bias(cols2, w2, b2, apply_relu=True,
                             out_dtype=ACT_DTYPE, x_layout="k_split")
    y2 = y2.reshape(2 * B, oh2, ow2, 64)                         # [2B,h,w,64]

    # --- conv3: per-network, stacked on the group axis (G=2)
    cols3, oh3, ow3 = _im2col(y2, 3, 3, 1)
    cols3 = cols3.reshape(2, B * oh3 * ow3, 64 * 3 * 3)
    w3 = jnp.stack([target_params["c3_w"], predictor_params["c3_w"]], 0)
    b3 = jnp.stack([target_params["c3_b"], predictor_params["c3_b"]], 0)
    y3 = grouped_matmul_bias(cols3, w3, b3, apply_relu=True,
                             out_dtype=ACT_DTYPE)                # [2, M3, 64]

    # --- flatten in PyTorch NCHW order, then fused fc1 -> ReLU -> fc2
    y3 = y3.reshape(2, B, oh3, ow3, 64)
    feat = jnp.transpose(y3, (0, 1, 4, 2, 3)).reshape(2, B, 64 * oh3 * ow3)
    wf1 = jnp.stack([target_params["fc1_w"], predictor_params["fc1_w"]], 0)
    bf1 = jnp.stack([target_params["fc1_b"], predictor_params["fc1_b"]], 0)
    wf2 = jnp.stack([target_params["fc2_w"], predictor_params["fc2_w"]], 0)
    bf2 = jnp.stack([target_params["fc2_b"], predictor_params["fc2_b"]], 0)
    out = grouped_fc_fused(feat, wf1, bf1, wf2, bf2)             # [2, B, 512]

    target_out, pred_out = out[0], out[1]
    return pred_out, target_out


# ----------------------------------------------------------------------------
# Pure-JAX f32 reference (per-network, no Pallas) for the sanity check.
# ----------------------------------------------------------------------------
def _reference_network(params, x_nchw):
    B = x_nchw.shape[0]
    x = jnp.transpose(x_nchw, (0, 2, 3, 1)).astype(jnp.float32)
    for name, k, s in (("c1", 8, 4), ("c2", 4, 2), ("c3", 3, 1)):
        cols, oh, ow = _im2col(x, k, k, s)
        y = jnp.maximum(cols @ params[f"{name}_w"] + params[f"{name}_b"], 0.0)
        x = y.reshape(B, oh, ow, -1)
    feat = jnp.transpose(x, (0, 3, 1, 2)).reshape(B, -1)
    h = jnp.maximum(feat @ params["fc1_w"] + params["fc1_b"], 0.0)
    return h @ params["fc2_w"] + params["fc2_b"]


# ----------------------------------------------------------------------------
if __name__ == "__main__":
    # Small shapes: batch=2, input_shape=(3, 36, 36)
    #   conv stack: 36 -> 8 -> 3 -> 1  => conv_out_size = 64*1*1 = 64
    input_shape = (3, 36, 36)
    batch = 2

    key = jax.random.PRNGKey(0)
    k_tgt, k_pred, k_x = jax.random.split(key, 3)

    target_params = build_network_params(k_tgt, input_shape)
    predictor_params = build_network_params(k_pred, input_shape)

    x = jax.random.normal(k_x, (batch,) + input_shape, dtype=jnp.float32)

    pred_out, target_out = jax.jit(rnd_forward)(target_params,
                                                predictor_params, x)
    jax.block_until_ready((pred_out, target_out))

    assert pred_out.shape == (batch, 512), pred_out.shape
    assert target_out.shape == (batch, 512), target_out.shape
    assert pred_out.dtype == jnp.float32 and target_out.dtype == jnp.float32

    # Sanity-check the grouped / padded / fused bf16 Pallas path vs f32 JAX.
    ref_t = _reference_network(target_params, x)
    ref_p = _reference_network(predictor_params, x)
    exact_f32 = (MXU_DTYPE == jnp.float32) and (ACT_DTYPE == jnp.float32)
    tol = 1e-4 if exact_f32 else 2e-2
    err_t = float(jnp.max(jnp.abs(target_out - ref_t)))
    err_p = float(jnp.max(jnp.abs(pred_out - ref_p)))
    assert err_t < tol, ("target mismatch", err_t, tol)
    assert err_p < tol, ("predictor mismatch", err_p, tol)

    print("KERNEL_OK")
</pallas_src>

<mosaic_0001>
module attributes {stable_mosaic.version = 11 : i64} {
  func.func @_matmul_bias_kernel(%arg0: i32, %arg1: i32, %arg2: memref<1x128x192xbf16, #tpu.memory_space<vmem>>, %arg3: memref<1x192x128xbf16, #tpu.memory_space<vmem>>, %arg4: memref<1x1x128xf32, #tpu.memory_space<vmem>>, %arg5: memref<1x128x128xbf16, #tpu.memory_space<vmem>>) attributes {dimension_semantics = [#tpu.dimension_semantics<parallel>, #tpu.dimension_semantics<parallel>], iteration_bounds = array<i64: 1, 1>, scalar_prefetch = 0 : i64, scratch_operands = 0 : i64, tpu.core_type = #tpu.core_type<tc>, window_params = [{transform_indices = @transform_0, window_bounds = array<i64: 1, 128, 192>}, {transform_indices = @transform_1, window_bounds = array<i64: 1, 192, 128>}, {transform_indices = @transform_2, window_bounds = array<i64: 1, 1, 128>}, {transform_indices = @transform_3, window_bounds = array<i64: 1, 128, 128>}]} {
    %c0 = arith.constant 0 : index
    %c0_0 = arith.constant 0 : index
    %c0_1 = arith.constant 0 : index
    %0 = vector.load %arg2[%c0, %c0_0, %c0_1] : memref<1x128x192xbf16, #tpu.memory_space<vmem>>, vector<1x128x192xbf16>
    %1 = vector.shape_cast %0 : vector<1x128x192xbf16> to vector<128x192xbf16>
    %c0_2 = arith.constant 0 : index
    %c0_3 = arith.constant 0 : index
    %c0_4 = arith.constant 0 : index
    %2 = vector.load %arg3[%c0_2, %c0_3, %c0_4] : memref<1x192x128xbf16, #tpu.memory_space<vmem>>, vector<1x192x128xbf16>
    %3 = vector.shape_cast %2 : vector<1x192x128xbf16> to vector<192x128xbf16>
    %cst = arith.constant dense<0.000000e+00> : vector<128x128xf32>
    %4 = tpu.matmul %1, %3, %cst {dimension_numbers = #tpu.dot_dimension_numbers<[1], [0], [0], [1], [0, 0, 1, 1], [], []>} : vector<128x192xbf16>, vector<192x128xbf16>, vector<128x128xf32> -> vector<128x128xf32>
    %c0_5 = arith.constant 0 : index
    %c0_6 = arith.constant 0 : index
    %c0_7 = arith.constant 0 : index
    %5 = vector.load %arg4[%c0_5, %c0_6, %c0_7] : memref<1x1x128xf32, #tpu.memory_space<vmem>>, vector<1x1x128xf32>
    %6 = vector.shape_cast %5 : vector<1x1x128xf32> to vector<1x128xf32>
    %7 = vector.broadcast %6 : vector<1x128xf32> to vector<128x128xf32>
    %8 = arith.addf %4, %7 : vector<128x128xf32>
    %cst_8 = arith.constant 0.000000e+00 : f32
    %9 = vector.broadcast %cst_8 : f32 to vector<128x128xf32>
    %10 = arith.maximumf %8, %9 : vector<128x128xf32>
    %11 = arith.truncf %10 : vector<128x128xf32> to vector<128x128xbf16>
    %c0_9 = arith.constant 0 : index
    %c0_10 = arith.constant 0 : index
    %c0_11 = arith.constant 0 : index
    %12 = vector.load %arg5[%c0_9, %c0_10, %c0_11] : memref<1x128x128xbf16, #tpu.memory_space<vmem>>, vector<1x128x128xbf16>
    %13 = vector.shape_cast %12 : vector<1x128x128xbf16> to vector<128x128xbf16>
    %14 = vector.shape_cast %11 : vector<128x128xbf16> to vector<1x128x128xbf16>
    tpu.vector_store %arg5[%c0_9, %c0_10, %c0_11], %14 {strides = array<i32>} : memref<1x128x128xbf16, #tpu.memory_space<vmem>>, vector<1x128x128xbf16>,
    return
  }
  func.func @transform_0(%arg0: i32, %arg1: i32) -> (i32, i32, i32) {
    %c0_i32 = arith.constant 0 : i32
    %c0_i32_0 = arith.constant 0 : i32
    return %arg0, %arg1, %c0_i32 : i32, i32, i32
  }
  func.func @transform_1(%arg0: i32, %arg1: i32) -> (i32, i32, i32) {
    %c0_i32 = arith.constant 0 : i32
    %c0_i32_0 = arith.constant 0 : i32
    %c0_i32_1 = arith.constant 0 : i32
    return %arg0, %c0_i32, %c0_i32_0 : i32, i32, i32
  }
  func.func @transform_2(%arg0: i32, %arg1: i32) -> (i32, i32, i32) {
    %c0_i32 = arith.constant 0 : i32
    %c0_i32_0 = arith.constant 0 : i32
    %c0_i32_1 = arith.constant 0 : i32
    return %arg0, %c0_i32, %c0_i32_0 : i32, i32, i32
  }
  func.func @transform_3(%arg0: i32, %arg1: i32) -> (i32, i32, i32) {
    %c0_i32 = arith.constant 0 : i32
    %c0_i32_0 = arith.constant 0 : i32
    return %arg0, %arg1, %c0_i32 : i32, i32, i32
  }
}

module attributes {stable_mosaic.version = 11 : i64} {
  func.func @_matmul_bias_kernel(%arg0: i32, %arg1: i32, %arg2: memref<32x512xbf16, #tpu.memory_space<vmem>>, %arg3: memref<1x512x128xbf16, #tpu.memory_space<vmem>>, %arg4: memref<1x1x128xf32, #tpu.memory_space<vmem>>, %arg5: memref<1x32x128xbf16, #tpu.memory_space<vmem>>) attributes {dimension_semantics = [#tpu.dimension_semantics<parallel>, #tpu.dimension_semantics<parallel>], iteration_bounds = array<i64: 2, 1>, scalar_prefetch = 0 : i64, scratch_operands = 0 : i64, tpu.core_type = #tpu.core_type<tc>, window_params = [{transform_indices = @transform_0, window_bounds = array<i64: 32, 512>}, {transform_indices = @transform_1, window_bounds = array<i64: 1, 512, 128>}, {transform_indices = @transform_2, window_bounds = array<i64: 1, 1, 128>}, {transform_indices = @transform_3, window_bounds = array<i64: 1, 32, 128>}]} {
    %c0 = arith.constant 0 : index
    %c0_0 = arith.constant 0 : index
    %0 = vector.load %arg2[%c0, %c0_0] : memref<32x512xbf16, #tpu.memory_space<vmem>>, vector<32x512xbf16>
    %c0_1 = arith.constant 0 : index
    %c0_2 = arith.constant 0 : index
    %c0_3 = arith.constant 0 : index
    %1 = vector.load %arg3[%c0_1, %c0_2, %c0_3] : memref<1x512x128xbf16, #tpu.memory_space<vmem>>, vector<1x512x128xbf16>
    %2 = vector.shape_cast %1 : vector<1x512x128xbf16> to vector<512x128xbf16>
    %cst = arith.constant dense<0.000000e+00> : vector<32x128xf32>
    %3 = tpu.matmul %0, %2, %cst {dimension_numbers = #tpu.dot_dimension_numbers<[1], [0], [0], [1], [0, 0, 1, 1], [], []>} : vector<32x512xbf16>, vector<512x128xbf16>, vector<32x128xf32> -> vector<32x128xf32>
    %c0_4 = arith.constant 0 : index
    %c0_5 = arith.constant 0 : index
    %c0_6 = arith.constant 0 : index
    %4 = vector.load %arg4[%c0_4, %c0_5, %c0_6] : memref<1x1x128xf32, #tpu.memory_space<vmem>>, vector<1x1x128xf32>
    %5 = vector.shape_cast %4 : vector<1x1x128xf32> to vector<1x128xf32>
    %6 = vector.broadcast %5 : vector<1x128xf32> to vector<32x128xf32>
    %7 = arith.addf %3, %6 : vector<32x128xf32>
    %cst_7 = arith.constant 0.000000e+00 : f32
    %8 = vector.broadcast %cst_7 : f32 to vector<32x128xf32>
    %9 = arith.maximumf %7, %8 : vector<32x128xf32>
    %10 = arith.truncf %9 : vector<32x128xf32> to vector<32x128xbf16>
    %c0_8 = arith.constant 0 : index
    %c0_9 = arith.constant 0 : index
    %c0_10 = arith.constant 0 : index
    %11 = vector.load %arg5[%c0_8, %c0_9, %c0_10] : memref<1x32x128xbf16, #tpu.memory_space<vmem>>, vector<1x32x128xbf16>
    %12 = vector.shape_cast %11 : vector<1x32x128xbf16> to vector<32x128xbf16>
    %13 = vector.shape_cast %10 : vector<32x128xbf16> to vector<1x32x128xbf16>
    tpu.vector_store %arg5[%c0_8, %c0_9, %c0_10], %13 {strides = array<i32>} : memref<1x32x128xbf16, #tpu.memory_space<vmem>>, vector<1x32x128xbf16>,
    return
  }
  func.func @transform_0(%arg0: i32, %arg1: i32) -> (i32, i32) {
    %c0_i32 = arith.constant 0 : i32
    return %arg1, %arg0 : i32, i32
  }
  func.func @transform_1(%arg0: i32, %arg1: i32) -> (i32, i32, i32) {
    %c0_i32 = arith.constant 0 : i32
    %c0_i32_0 = arith.constant 0 : i32
    %c0_i32_1 = arith.constant 0 : i32
    return %arg0, %c0_i32, %c0_i32_0 : i32, i32, i32
  }
  func.func @transform_2(%arg0: i32, %arg1: i32) -> (i32, i32, i32) {
    %c0_i32 = arith.constant 0 : i32
    %c0_i32_0 = arith.constant 0 : i32
    %c0_i32_1 = arith.constant 0 : i32
    return %arg0, %c0_i32, %c0_i32_0 : i32, i32, i32
  }
  func.func @transform_3(%arg0: i32, %arg1: i32) -> (i32, i32, i32) {
    %c0_i32 = arith.constant 0 : i32
    %c0_i32_0 = arith.constant 0 : i32
    return %arg0, %arg1, %c0_i32 : i32, i32, i32
  }
}

module attributes {stable_mosaic.version = 11 : i64} {
  func.func @_matmul_bias_kernel(%arg0: i32, %arg1: i32, %arg2: memref<1x16x576xbf16, #tpu.memory_space<vmem>>, %arg3: memref<1x576x128xbf16, #tpu.memory_space<vmem>>, %arg4: memref<1x1x128xf32, #tpu.memory_space<vmem>>, %arg5: memref<1x16x128xbf16, #tpu.memory_space<vmem>>) attributes {dimension_semantics = [#tpu.dimension_semantics<parallel>, #tpu.dimension_semantics<parallel>], iteration_bounds = array<i64: 2, 1>, scalar_prefetch = 0 : i64, scratch_operands = 0 : i64, tpu.core_type = #tpu.core_type<tc>, window_params = [{transform_indices = @transform_0, window_bounds = array<i64: 1, 16, 576>}, {transform_indices = @transform_1, window_bounds = array<i64: 1, 576, 128>}, {transform_indices = @transform_2, window_bounds = array<i64: 1, 1, 128>}, {transform_indices = @transform_3, window_bounds = array<i64: 1, 16, 128>}]} {
    %c0 = arith.constant 0 : index
    %c0_0 = arith.constant 0 : index
    %c0_1 = arith.constant 0 : index
    %0 = vector.load %arg2[%c0, %c0_0, %c0_1] : memref<1x16x576xbf16, #tpu.memory_space<vmem>>, vector<1x16x576xbf16>
    %1 = vector.shape_cast %0 : vector<1x16x576xbf16> to vector<16x576xbf16>
    %c0_2 = arith.constant 0 : index
    %c0_3 = arith.constant 0 : index
    %c0_4 = arith.constant 0 : index
    %2 = vector.load %arg3[%c0_2, %c0_3, %c0_4] : memref<1x576x128xbf16, #tpu.memory_space<vmem>>, vector<1x576x128xbf16>
    %3 = vector.shape_cast %2 : vector<1x576x128xbf16> to vector<576x128xbf16>
    %cst = arith.constant dense<0.000000e+00> : vector<16x128xf32>
    %4 = tpu.matmul %1, %3, %cst {dimension_numbers = #tpu.dot_dimension_numbers<[1], [0], [0], [1], [0, 0, 1, 1], [], []>} : vector<16x576xbf16>, vector<576x128xbf16>, vector<16x128xf32> -> vector<16x128xf32>
    %c0_5 = arith.constant 0 : index
    %c0_6 = arith.constant 0 : index
    %c0_7 = arith.constant 0 : index
    %5 = vector.load %arg4[%c0_5, %c0_6, %c0_7] : memref<1x1x128xf32, #tpu.memory_space<vmem>>, vector<1x1x128xf32>
    %6 = vector.shape_cast %5 : vector<1x1x128xf32> to vector<1x128xf32>
    %7 = vector.broadcast %6 : vector<1x128xf32> to vector<16x128xf32>
    %8 = arith.addf %4, %7 : vector<16x128xf32>
    %cst_8 = arith.constant 0.000000e+00 : f32
    %9 = vector.broadcast %cst_8 : f32 to vector<16x128xf32>
    %10 = arith.maximumf %8, %9 : vector<16x128xf32>
    %11 = arith.truncf %10 : vector<16x128xf32> to vector<16x128xbf16>
    %c0_9 = arith.constant 0 : index
    %c0_10 = arith.constant 0 : index
    %c0_11 = arith.constant 0 : index
    %12 = vector.load %arg5[%c0_9, %c0_10, %c0_11] : memref<1x16x128xbf16, #tpu.memory_space<vmem>>, vector<1x16x128xbf16>
    %13 = vector.shape_cast %12 : vector<1x16x128xbf16> to vector<16x128xbf16>
    %14 = vector.shape_cast %11 : vector<16x128xbf16> to vector<1x16x128xbf16>
    tpu.vector_store %arg5[%c0_9, %c0_10, %c0_11], %14 {strides = array<i32>} : memref<1x16x128xbf16, #tpu.memory_space<vmem>>, vector<1x16x128xbf16>,
    return
  }
  func.func @transform_0(%arg0: i32, %arg1: i32) -> (i32, i32, i32) {
    %c0_i32 = arith.constant 0 : i32
    %c0_i32_0 = arith.constant 0 : i32
    return %arg0, %arg1, %c0_i32 : i32, i32, i32
  }
  func.func @transform_1(%arg0: i32, %arg1: i32) -> (i32, i32, i32) {
    %c0_i32 = arith.constant 0 : i32
    %c0_i32_0 = arith.constant 0 : i32
    %c0_i32_1 = arith.constant 0 : i32
    return %arg0, %c0_i32, %c0_i32_0 : i32, i32, i32
  }
  func.func @transform_2(%arg0: i32, %arg1: i32) -> (i32, i32, i32) {
    %c0_i32 = arith.constant 0 : i32
    %c0_i32_0 = arith.constant 0 : i32
    %c0_i32_1 = arith.constant 0 : i32
    return %arg0, %c0_i32, %c0_i32_0 : i32, i32, i32
  }
  func.func @transform_3(%arg0: i32, %arg1: i32) -> (i32, i32, i32) {
    %c0_i32 = arith.constant 0 : i32
    %c0_i32_0 = arith.constant 0 : i32
    return %arg0, %arg1, %c0_i32 : i32, i32, i32
  }
}

module attributes {stable_mosaic.version = 11 : i64} {
  func.func @_fc_fused_kernel(%arg0: i32, %arg1: i32, %arg2: memref<1x16x64xbf16, #tpu.memory_space<vmem>>, %arg3: memref<1x64x512xbf16, #tpu.memory_space<vmem>>, %arg4: memref<1x1x512xf32, #tpu.memory_space<vmem>>, %arg5: memref<1x512x512xbf16, #tpu.memory_space<vmem>>, %arg6: memref<1x1x512xf32, #tpu.memory_space<vmem>>, %arg7: memref<1x16x512xf32, #tpu.memory_space<vmem>>) attributes {dimension_semantics = [#tpu.dimension_semantics<parallel>, #tpu.dimension_semantics<parallel>], iteration_bounds = array<i64: 2, 1>, scalar_prefetch = 0 : i64, scratch_operands = 0 : i64, tpu.core_type = #tpu.core_type<tc>, window_params = [{transform_indices = @transform_0, window_bounds = array<i64: 1, 16, 64>}, {transform_indices = @transform_1, window_bounds = array<i64: 1, 64, 512>}, {transform_indices = @transform_2, window_bounds = array<i64: 1, 1, 512>}, {transform_indices = @transform_3, window_bounds = array<i64: 1, 512, 512>}, {transform_indices = @transform_4, window_bounds = array<i64: 1, 1, 512>}, {transform_indices = @transform_5, window_bounds = array<i64: 1, 16, 512>}]} {
    %c0 = arith.constant 0 : index
    %c0_0 = arith.constant 0 : index
    %c0_1 = arith.constant 0 : index
    %0 = vector.load %arg2[%c0, %c0_0, %c0_1] : memref<1x16x64xbf16, #tpu.memory_space<vmem>>, vector<1x16x64xbf16>
    %1 = vector.shape_cast %0 : vector<1x16x64xbf16> to vector<16x64xbf16>
    %c0_2 = arith.constant 0 : index
    %c0_3 = arith.constant 0 : index
    %c0_4 = arith.constant 0 : index
    %2 = vector.load %arg3[%c0_2, %c0_3, %c0_4] : memref<1x64x512xbf16, #tpu.memory_space<vmem>>, vector<1x64x512xbf16>
    %3 = vector.shape_cast %2 : vector<1x64x512xbf16> to vector<64x512xbf16>
    %cst = arith.constant dense<0.000000e+00> : vector<16x512xf32>
    %4 = tpu.matmul %1, %3, %cst {dimension_numbers = #tpu.dot_dimension_numbers<[1], [0], [0], [1], [0, 0, 1, 1], [], []>} : vector<16x64xbf16>, vector<64x512xbf16>, vector<16x512xf32> -> vector<16x512xf32>
    %c0_5 = arith.constant 0 : index
    %c0_6 = arith.constant 0 : index
    %c0_7 = arith.constant 0 : index
    %5 = vector.load %arg4[%c0_5, %c0_6, %c0_7] : memref<1x1x512xf32, #tpu.memory_space<vmem>>, vector<1x1x512xf32>
    %6 = vector.shape_cast %5 : vector<1x1x512xf32> to vector<1x512xf32>
    %7 = vector.broadcast %6 : vector<1x512xf32> to vector<16x512xf32>
    %8 = arith.addf %4, %7 : vector<16x512xf32>
    %cst_8 = arith.constant 0.000000e+00 : f32
    %9 = vector.broadcast %cst_8 : f32 to vector<16x512xf32>
    %10 = arith.maximumf %8, %9 : vector<16x512xf32>
    %11 = arith.truncf %10 : vector<16x512xf32> to vector<16x512xbf16>
    %c0_9 = arith.constant 0 : index
    %c0_10 = arith.constant 0 : index
    %c0_11 = arith.constant 0 : index
    %12 = vector.load %arg5[%c0_9, %c0_10, %c0_11] : memref<1x512x512xbf16, #tpu.memory_space<vmem>>, vector<1x512x512xbf16>
    %13 = vector.shape_cast %12 : vector<1x512x512xbf16> to vector<512x512xbf16>
    %cst_12 = arith.constant dense<0.000000e+00> : vector<16x512xf32>
    %14 = tpu.matmul %11, %13, %cst_12 {dimension_numbers = #tpu.dot_dimension_numbers<[1], [0], [0], [1], [0, 0, 1, 1], [], []>} : vector<16x512xbf16>, vector<512x512xbf16>, vector<16x512xf32> -> vector<16x512xf32>
    %c0_13 = arith.constant 0 : index
    %c0_14 = arith.constant 0 : index
    %c0_15 = arith.constant 0 : index
    %15 = vector.load %arg6[%c0_13, %c0_14, %c0_15] : memref<1x1x512xf32, #tpu.memory_space<vmem>>, vector<1x1x512xf32>
    %16 = vector.shape_cast %15 : vector<1x1x512xf32> to vector<1x512xf32>
    %17 = vector.broadcast %16 : vector<1x512xf32> to vector<16x512xf32>
    %18 = arith.addf %14, %17 : vector<16x512xf32>
    %c0_16 = arith.constant 0 : index
    %c0_17 = arith.constant 0 : index
    %c0_18 = arith.constant 0 : index
    %19 = vector.load %arg7[%c0_16, %c0_17, %c0_18] : memref<1x16x512xf32, #tpu.memory_space<vmem>>, vector<1x16x512xf32>
    %20 = vector.shape_cast %19 : vector<1x16x512xf32> to vector<16x512xf32>
    %21 = vector.shape_cast %18 : vector<16x512xf32> to vector<1x16x512xf32>
    tpu.vector_store %arg7[%c0_16, %c0_17, %c0_18], %21 {strides = array<i32>} : memref<1x16x512xf32, #tpu.memory_space<vmem>>, vector<1x16x512xf32>,
    return
  }
  func.func @transform_0(%arg0: i32, %arg1: i32) -> (i32, i32, i32) {
    %c0_i32 = arith.constant 0 : i32
    %c0_i32_0 = arith.constant 0 : i32
    return %arg0, %arg1, %c0_i32 : i32, i32, i32
  }
  func.func @transform_1(%arg0: i32, %arg1: i32) -> (i32, i32, i32) {
    %c0_i32 = arith.constant 0 : i32
    %c0_i32_0 = arith.constant 0 : i32
    %c0_i32_1 = arith.constant 0 : i32
    return %arg0, %c0_i32, %c0_i32_0 : i32, i32, i32
  }
  func.func @transform_2(%arg0: i32, %arg1: i32) -> (i32, i32, i32) {
    %c0_i32 = arith.constant 0 : i32
    %c0_i32_0 = arith.constant 0 : i32
    %c0_i32_1 = arith.constant 0 : i32
    return %arg0, %c0_i32, %c0_i32_0 : i32, i32, i32
  }
  func.func @transform_3(%arg0: i32, %arg1: i32) -> (i32, i32, i32) {
    %c0_i32 = arith.constant 0 : i32
    %c0_i32_0 = arith.constant 0 : i32
    %c0_i32_1 = arith.constant 0 : i32
    return %arg0, %c0_i32, %c0_i32_0 : i32, i32, i32
  }
  func.func @transform_4(%arg0: i32, %arg1: i32) -> (i32, i32, i32) {
    %c0_i32 = arith.constant 0 : i32
    %c0_i32_0 = arith.constant 0 : i32
    %c0_i32_1 = arith.constant 0 : i32
    return %arg0, %c0_i32, %c0_i32_0 : i32, i32, i32
  }
  func.func @transform_5(%arg0: i32, %arg1: i32) -> (i32, i32, i32) {
    %c0_i32 = arith.constant 0 : i32
    %c0_i32_0 = arith.constant 0 : i32
    return %arg0, %arg1, %c0_i32 : i32, i32, i32
  }
}

</mosaic_0001>

<bundles_post_ra>
// kernel: rnd_forward.4
= control target key start
LH: loop header
LB: loop body
LE: loop exit
PB: predicated region body
PF: predicated region fallthrough
CT: control target
= control target key end

     0   :  { %v605_v0 = vmov 0   ;;  %vm206_vm0 = vcmask 523264   ;;  %s787_s1 = inlined_call_operand.vmem [shape: bf16[1,192,128], index: 1, kind: input, shape index: {}]   ;;  %s788_s0 = inlined_call_operand.vmem [shape: bf16[1,128,192], index: 0, kind: input, shape index: {}]   ;;  %s789_s2 = inlined_call_operand.vmem [shape: f32[1,1,128], index: 2, kind: input, shape index: {}]   ;;  %s790_s3 = inlined_call_operand.vmem [shape: bf16[1,128,128], index: 3, kind: output, shape index: {}]  }
   0x1   :  { %231 = vmatprep.subr.bf16.mxu0 %v605_v0  ;;  %544 = vmatprep.subr.bf16.mxu1 %v605_v0  ;;  %v569_v1 = vld [vmem:[%s787_s1] sm:$0xff]   ;;  %v570_v2 = vld [vmem:[%s787_s1 + $0x8] sm:$0xff]   ;;  %v571_v3 = vld [vmem:[%s787_s1 + $0x10] sm:$0xff]  }
   0x2   :  { %232 = vmatpush1.bf16.msra.mxu0 %v569_v1  ;;  %556 = vmatpush1.bf16.msra.mxu1 %v569_v1  ;;  %v572_v4 = vld [vmem:[%s787_s1 + $0x18] sm:$0xff]   ;;  %v583_v5 = vld [vmem:[%s788_s0 + $0x4] ss:$8 sps:$4 sm:$0xff]   ;;  %v575_v9 = vld [vmem:[%s787_s1 + $0x30] sm:$0xff]  }
   0x3   :  { %233 = vmatprep.subr.bf16.mxu0 %v605_v0  ;;  %545 = vmatprep.subr.bf16.mxu1 %v605_v0  ;;  %v573_v6 = vld [vmem:[%s787_s1 + $0x20] sm:$0xff]   ;;  %v574_v8 = vld [vmem:[%s787_s1 + $0x28] sm:$0xff]   ;;  %v576_v10 = vld [vmem:[%s787_s1 + $0x38] sm:$0xff]  }
   0x4   :  { %v586_v7 = vld [vmem:[%s788_s0 + $0x44] ss:$8 sps:$4 sm:$0xff]   ;;  %457 = vmatprep.mubr.msk.bf16.mxu0 %vm206_vm0, %v583_v5  ;;  %v579_v13 = vld [vmem:[%s787_s1 + $0x50] sm:$0xff]   ;;  %v580_v14 = vld [vmem:[%s787_s1 + $0x58] sm:$0xff]  }
   0x5   :  { %461 = vmatprep.mubr.msk.bf16.mxu1 %vm206_vm0, %v586_v7  ;;  %v577_v11 = vld [vmem:[%s787_s1 + $0x40] sm:$0xff]   ;;  %v578_v12 = vld [vmem:[%s787_s1 + $0x48] sm:$0xff]   ;;  %v587_v17 = vld [vmem:[%s788_s0 + $0x14] ss:$8 sps:$4 sm:$0xff]  }
   0x6   :  { %234 = vmatpush1.bf16.msra.mxu0 %v570_v2  ;;  %557 = vmatpush1.bf16.msra.mxu1 %v570_v2  ;;  %v581_v15 = vld [vmem:[%s788_s0] ss:$8 sps:$4 sm:$0xff]   ;;  %v589_v18 = vld [vmem:[%s788_s0 + $0x54] ss:$8 sps:$4 sm:$0xff]   ;;  %v591_v19 = vld [vmem:[%s788_s0 + $0x10] ss:$8 sps:$4 sm:$0xff]  }
   0x7   :  { %235 = vmatprep.subr.bf16.mxu0 %v605_v0  ;;  %546 = vmatprep.subr.bf16.mxu1 %v605_v0  ;;  %v584_v16 = vld [vmem:[%s788_s0 + $0x40] ss:$8 sps:$4 sm:$0xff]   ;;  %v592_v20 = vld [vmem:[%s788_s0 + $0x50] ss:$8 sps:$4 sm:$0xff]   ;;  %v593_v21 = vld [vmem:[%s788_s0 + $0x24] ss:$8 sps:$4 sm:$0xff]  }
   0x8   :  { %v595_v22 = vld [vmem:[%s788_s0 + $0x64] ss:$8 sps:$4 sm:$0xff]   ;;  %v597_v23 = vld [vmem:[%s788_s0 + $0x20] ss:$8 sps:$4 sm:$0xff]   ;;  %v599_v25 = vld [vmem:[%s788_s0 + $0x34] ss:$8 sps:$4 sm:$0xff]  }
   0x9   :  { %v598_v24 = vld [vmem:[%s788_s0 + $0x60] ss:$8 sps:$4 sm:$0xff]   ;;  %v601_v26 = vld [vmem:[%s788_s0 + $0x74] ss:$8 sps:$4 sm:$0xff]   ;;  %v603_v27 = vld [vmem:[%s788_s0 + $0x30] ss:$8 sps:$4 sm:$0xff]  }
   0xa   :  { %236 = vmatpush1.bf16.msra.mxu0 %v571_v3  ;;  %558 = vmatpush1.bf16.msra.mxu1 %v571_v3  ;;  %v604_v28 = vld [vmem:[%s788_s0 + $0x70] ss:$8 sps:$4 sm:$0xff]   ;;  %v745_v29 = vld [vmem:[%s789_s2] ss:$0 sm:$0xff] }
   0xb   :  { %237 = vmatprep.subr.bf16.mxu0 %v605_v0  ;;  %547 = vmatprep.subr.bf16.mxu1 %v605_v0 }
   0xe   :  { %238 = vmatpush1.bf16.msra.mxu0 %v572_v4  ;;  %559 = vmatpush1.bf16.msra.mxu1 %v572_v4 }
   0xf   :  { %239 = vmatprep.subr.bf16.mxu0 %v605_v0  ;;  %548 = vmatprep.subr.bf16.mxu1 %v605_v0 }
  0x12   :  { %240 = vmatpush1.bf16.msra.mxu0 %v573_v6  ;;  %560 = vmatpush1.bf16.msra.mxu1 %v573_v6 }
  0x13   :  { %241 = vmatprep.subr.bf16.mxu0 %v605_v0  ;;  %549 = vmatprep.subr.bf16.mxu1 %v605_v0 }
  0x16   :  { %242 = vmatpush1.bf16.msra.mxu0 %v574_v8  ;;  %561 = vmatpush1.bf16.msra.mxu1 %v574_v8 }
  0x17   :  { %243 = vmatprep.subr.bf16.mxu0 %v605_v0  ;;  %550 = vmatprep.subr.bf16.mxu1 %v605_v0 }
  0x1a   :  { %244 = vmatpush1.bf16.msra.mxu0 %v575_v9  ;;  %562 = vmatpush1.bf16.msra.mxu1 %v575_v9 }
  0x1b   :  { %245 = vmatprep.subr.bf16.mxu0 %v605_v0  ;;  %551 = vmatprep.subr.bf16.mxu1 %v605_v0 }
  0x1e   :  { %246 = vmatpush1.bf16.msra.mxu0 %v576_v10  ;;  %563 = vmatpush1.bf16.msra.mxu1 %v576_v10 }
  0x1f   :  { %247 = vmatprep.subr.bf16.mxu0 %v605_v0  ;;  %552 = vmatprep.subr.bf16.mxu1 %v605_v0 }
  0x22   :  { %248 = vmatpush1.bf16.msra.mxu0 %v577_v11  ;;  %564 = vmatpush1.bf16.msra.mxu1 %v577_v11 }
  0x23   :  { %249 = vmatprep.subr.bf16.mxu0 %v605_v0  ;;  %553 = vmatprep.subr.bf16.mxu1 %v605_v0 }
  0x26   :  { %250 = vmatpush1.bf16.msra.mxu0 %v578_v12  ;;  %565 = vmatpush1.bf16.msra.mxu1 %v578_v12 }
  0x27   :  { %251 = vmatprep.subr.bf16.mxu0 %v605_v0  ;;  %554 = vmatprep.subr.bf16.mxu1 %v605_v0 }
  0x2a   :  { %252 = vmatpush1.bf16.msra.mxu0 %v579_v13  ;;  %566 = vmatpush1.bf16.msra.mxu1 %v579_v13 }
  0x2b   :  { %253 = vmatprep.subr.bf16.mxu0 %v605_v0  ;;  %555 = vmatprep.subr.bf16.mxu1 %v605_v0 }
  0x2e   :  { %254 = vmatpush1.bf16.msra.mxu0 %v580_v14  ;;  %567 = vmatpush1.bf16.msra.mxu1 %v580_v14 }
  0x31   :  { %264 = vmatmul.mubr.bf16.vlgmr.msra.gmra.mrb[0].mxu0 %v581_v15  ;;  %296 = vmatmul.mubr.bf16.vlgmr.msra.gmra.mrb[0].mxu1 %v584_v16 }
  0x32   :  { %458 = vmatprep.mubr.msk.bf16.mxu0 %vm206_vm0, %v587_v17  ;;  %462 = vmatprep.mubr.msk.bf16.mxu1 %vm206_vm0, %v589_v18 }
  0x39   :  { %272 = vmatmul.mubr.bf16.gmra.mrb[4].mxu0 %v591_v19  ;;  %304 = vmatmul.mubr.bf16.gmra.mrb[4].mxu1 %v592_v20 }
  0x3a   :  { %459 = vmatprep.mubr.msk.bf16.mxu0 %vm206_vm0, %v593_v21  ;;  %463 = vmatprep.mubr.msk.bf16.mxu1 %vm206_vm0, %v595_v22 }
  0x41   :  { %280 = vmatmul.mubr.bf16.gmra.mrb[8].mxu0 %v597_v23  ;;  %312 = vmatmul.mubr.bf16.gmra.mrb[8].mxu1 %v598_v24 }
  0x42   :  { %460 = vmatprep.mubr.msk.bf16.mxu0 %vm206_vm0, %v599_v25  ;;  %464 = vmatprep.mubr.msk.bf16.mxu1 %vm206_vm0, %v601_v26 }
  0x49   :  { %288 = vmatmul.mubr.bf16.gmra.mrb[12].mxu0 %v603_v27  ;;  %320 = vmatmul.mubr.bf16.gmra.mrb[12].mxu1 %v604_v28 }
 0x104   :  { %v265_v30 = vpop.f32.mrb[0].mxu0  ;;  %v297_v31 = vpop.f32.mrb[0].mxu1 }
 0x105   :  { %v266_v32 = vadd.f32 %v745_v29, %v265_v30  ;;  %v298_v33 = vadd.f32 %v745_v29, %v297_v31  ;;  %v267_v34 = vpop.f32.mrb[1].mxu0  ;;  %v299_v35 = vpop.f32.mrb[1].mxu1 }
 0x106   :  { %v268_v36 = vpop.f32.mrb[2].mxu0  ;;  %v300_v37 = vpop.f32.mrb[2].mxu1 }
 0x107   :  { %v269_v38 = vadd.f32 %v745_v29, %v268_v36  ;;  %v301_v39 = vadd.f32 %v745_v29, %v300_v37  ;;  %v270_v40 = vpop.f32.mrb[3].mxu0  ;;  %v302_v41 = vpop.f32.mrb[3].mxu1  ;;  %v328_v42 = vmax.f32 %v266_v32, 0.0  ;;  %v336_v43 = vmax.f32 %v298_v33, 0.0 }
 0x109   :  { %v329_v44 = vmax.f32 %v269_v38, 0.0  ;;  %v337_v45 = vmax.f32 %v301_v39, 0.0 }
 0x10b   :  { %v500_v46 = vpack.c.bf16 %v329_v44, %v328_v42  ;;  %v520_v47 = vpack.c.bf16 %v337_v45, %v336_v43 }
 0x10c   :  { %v273_v48 = vpop.f32.mrb[4].mxu0  ;;  %v305_v49 = vpop.f32.mrb[4].mxu1 }
 0x10d   :  { %501 = vst [vmem:[%s790_s3] sm:$0xff] %v500_v46   ;;  %540 = vst [vmem:[%s790_s3 + $0x20] sm:$0xff] %v520_v47   ;;  %v274_v50 = vadd.f32 %v745_v29, %v273_v48  ;;  %v306_v51 = vadd.f32 %v745_v29, %v305_v49  ;;  %v275_v52 = vpop.f32.mrb[5].mxu0  ;;  %v307_v53 = vpop.f32.mrb[5].mxu1 }
 0x10e   :  { %v276_v54 = vpop.f32.mrb[6].mxu0  ;;  %v308_v55 = vpop.f32.mrb[6].mxu1 }
 0x10f   :  { %v277_v56 = vadd.f32 %v745_v29, %v276_v54  ;;  %v309_v57 = vadd.f32 %v745_v29, %v308_v55  ;;  %v278_v58 = vpop.f32.mrb[7].mxu0  ;;  %v310_v59 = vpop.f32.mrb[7].mxu1  ;;  %v330_v60 = vmax.f32 %v274_v50, 0.0  ;;  %v338_v61 = vmax.f32 %v306_v51, 0.0 }
 0x111   :  { %v331_v62 = vmax.f32 %v277_v56, 0.0  ;;  %v339_v63 = vmax.f32 %v309_v57, 0.0 }
 0x113   :  { %v505_v0 = vpack.c.bf16 %v331_v62, %v330_v60  ;;  %v525_v1 = vpack.c.bf16 %v339_v63, %v338_v61 }
 0x114   :  { %v281_v2 = vpop.f32.mrb[8].mxu0  ;;  %v313_v3 = vpop.f32.mrb[8].mxu1 }
 0x115   :  { %537 = vst [vmem:[%s790_s3 + $0x8] sm:$0xff] %v505_v0   ;;  %541 = vst [vmem:[%s790_s3 + $0x28] sm:$0xff] %v525_v1   ;;  %v282_v4 = vadd.f32 %v745_v29, %v281_v2  ;;  %v314_v5 = vadd.f32 %v745_v29, %v313_v3  ;;  %v283_v6 = vpop.f32.mrb[9].mxu0  ;;  %v315_v7 = vpop.f32.mrb[9].mxu1 }
 0x116   :  { %v284_v8 = vpop.f32.mrb[10].mxu0  ;;  %v316_v9 = vpop.f32.mrb[10].mxu1 }
 0x117   :  { %v285_v10 = vadd.f32 %v745_v29, %v284_v8  ;;  %v317_v11 = vadd.f32 %v745_v29, %v316_v9  ;;  %v286_v12 = vpop.f32.mrb[11].mxu0  ;;  %v318_v13 = vpop.f32.mrb[11].mxu1  ;;  %v332_v14 = vmax.f32 %v282_v4, 0.0  ;;  %v340_v15 = vmax.f32 %v314_v5, 0.0 }
 0x119   :  { %v333_v16 = vmax.f32 %v285_v10, 0.0  ;;  %v341_v17 = vmax.f32 %v317_v11, 0.0 }
 0x11b   :  { %v510_v18 = vpack.c.bf16 %v333_v16, %v332_v14  ;;  %v530_v19 = vpack.c.bf16 %v341_v17, %v340_v15 }
 0x11c   :  { %v289_v20 = vpop.f32.mrb[12].mxu0  ;;  %v321_v21 = vpop.f32.mrb[12].mxu1 }
 0x11d   :  { %538 = vst [vmem:[%s790_s3 + $0x10] sm:$0xff] %v510_v18   ;;  %542 = vst [vmem:[%s790_s3 + $0x30] sm:$0xff] %v530_v19   ;;  %v290_v22 = vadd.f32 %v745_v29, %v289_v20  ;;  %v322_v23 = vadd.f32 %v745_v29, %v321_v21  ;;  %v291_v24 = vpop.f32.mrb[13].mxu0  ;;  %v323_v25 = vpop.f32.mrb[13].mxu1 }
 0x11e   :  { %v292_v26 = vpop.f32.mrb[14].mxu0  ;;  %v324_v27 = vpop.f32.mrb[14].mxu1 }
 0x11f   :  { %v293_v28 = vadd.f32 %v745_v29, %v292_v26  ;;  %v325_v30 = vadd.f32 %v745_v29, %v324_v27  ;;  %v294_v31 = vpop.f32.mrb[15].mxu0  ;;  %v326_v32 = vpop.f32.mrb[15].mxu1  ;;  %v334_v33 = vmax.f32 %v290_v22, 0.0  ;;  %v342_v34 = vmax.f32 %v322_v23, 0.0 }
 0x121   :  { %v335_v35 = vmax.f32 %v293_v28, 0.0  ;;  %v343_v36 = vmax.f32 %v325_v30, 0.0 }
 0x123   :  { %v515_v37 = vpack.c.bf16 %v335_v35, %v334_v33  ;;  %v535_v38 = vpack.c.bf16 %v343_v36, %v342_v34 }
 0x125   :  { %539 = vst [vmem:[%s790_s3 + $0x18] sm:$0xff] %v515_v37   ;;  %543 = vst [vmem:[%s790_s3 + $0x38] sm:$0xff] %v535_v38  }

// kernel: rnd_forward.5
= control target key start
LH: loop header
LB: loop body
LE: loop exit
PB: predicated region body
PF: predicated region fallthrough
CT: control target
= control target key end

     0   :  { %s1092_s12 = smov 0   ;;  %s1094_s13 = smov 0   ;;  %s1213_s0 = inlined_call_operand.vmem [shape: bf16[32,1024], index: 0, kind: input, shape index: {}]   ;;  %s1214_s1 = inlined_call_operand.vmem [shape: bf16[2,512,128], index: 1, kind: input, shape index: {}]   ;;  %s1215_s2 = inlined_call_operand.vmem [shape: f32[2,1,128], index: 2, kind: input, shape index: {}]   ;;  %s1216_s3 = inlined_call_operand.vmem [shape: bf16[2,32,128], index: 3, kind: output, shape index: {}]  }
   0x1   :  { %s1096_s14 = smov 0   ;;  %s1098_s15 = smov 0  }
   0x2   :  { %s1100_s16 = smov 0  }
   0x3 LB: > { %s25_s17 = sadd.s32 1, %s1066_s15  ;;  %p41_p1 = scmp.ne.s32.totalorder %s1058_s13, %s1054_s12  ;;  %s1070_s16 = sphi %s1100_s16, %s13_s16   ;;  %s1066_s15 = sphi %s1098_s15, %s1220_s15   ;;  %s1062_s14 = sphi %s1096_s14, %s1219_s14   ;;  %s1058_s13 = sphi %s1094_s13, %s1218_s13   ;;  %s1054_s12 = sphi %s1092_s12, %s1217_s12  }
   0x4   : > { %p27_p0 = scmp.ge.s32.totalorder %s25_s17, 2  ;;  %p42_p2 = scmp.eq.s32.totalorder %s1070_s16, 0 }
   0x5   : > { %s34_s19 = sadd.s32 1, %s1058_s13  ;;  %p817_p5 = scmp.ge.s32.totalorder %s1070_s16, 2 }
   0x6   : > { %s1222_s17 = smov (%p27_p0, %s25_s17), 0  ;;  %p43_p3 = por %p42_p2, %p41_p1 }
   0x7   : > { %s30_s18 = ssub.s32 %s1066_s15, %s1222_s17  ;;  %147 = sbr.rel (%p817_p5) target bundleno = 22 (0x16), region = 16 }
   0x8   : > { %p32_p4 = scmp.eq.s32.totalorder %s30_s18, 0 }
   0xa   : > { %s1127_s20 = scalar_select %p32_p4, %s1058_s13, %s34_s19  }
   0xe   : > { %150 = sbr.rel (!%p43_p3) target bundleno = 22 (0x16), region = 20  ;;  %s152_s21 = sand.u32 (%p43_p3), 1, %s1058_s13  }
   0xf   : > { %s874_s22 = sshll.u32 (%p43_p3), %s1066_s15, 4  ;;  %s818_s23 = sshll.u32 (%p43_p3), %s152_s21, 6 }
  0x10   : > { %s160_s26 = scalar_lea.vmem (%p43_p3), %s1213_s0, %s874_s22  ;;  %s154_s27 = scalar_lea.vmem (%p43_p3), [#allocation2], %s818_s23 }
  0x11   : > { %v173_v0 = vld [vmem:[%s160_s26] sm:$0xff] (%p43_p3)  ;;  %v175_v1 = vld [vmem:[%s160_s26 + $0x8] sm:$0xff] (%p43_p3) }
  0x12   : > { %v177_v2 = vld [vmem:[%s160_s26 + $0x20] sm:$0xff] (%p43_p3)  ;;  %174 = vst [vmem:[%s154_s27] sm:$0xff] (%p43_p3), %v173_v0  ;;  %176 = vst [vmem:[%s154_s27 + $0x8] sm:$0xff] (%p43_p3), %v175_v1  ;;  %v179_v3 = vld [vmem:[%s160_s26 + $0x28] sm:$0xff] (%p43_p3) }
  0x13   : > { %178 = vst [vmem:[%s154_s27 + $0x10] sm:$0xff] (%p43_p3), %v177_v2  ;;  %v181_v4 = vld [vmem:[%s160_s26 + $0x40] sm:$0xff] (%p43_p3)  ;;  %v183_v5 = vld [vmem:[%s160_s26 + $0x48] sm:$0xff] (%p43_p3)  ;;  %180 = vst [vmem:[%s154_s27 + $0x18] sm:$0xff] (%p43_p3), %v179_v3 }
  0x14   : > { %182 = vst [vmem:[%s154_s27 + $0x20] sm:$0xff] (%p43_p3), %v181_v4  ;;  %184 = vst [vmem:[%s154_s27 + $0x28] sm:$0xff] (%p43_p3), %v183_v5  ;;  %v185_v6 = vld [vmem:[%s160_s26 + $0x60] sm:$0xff] (%p43_p3)  ;;  %v187_v7 = vld [vmem:[%s160_s26 + $0x68] sm:$0xff] (%p43_p3) }
  0x15   : > { %186 = vst [vmem:[%s154_s27 + $0x30] sm:$0xff] %v185_v6  ;;  %188 = vst [vmem:[%s154_s27 + $0x38] sm:$0xff] %v187_v7 }
  0x16 PF: > { %p821_p6 = scmp.ge.s32.totalorder %s1070_s16, 1  ;;  %p207_p7 = scmp.lt.s32.totalorder %s1070_s16, 3 }
  0x18   : > { %p208_p8 = pnand %p821_p6, %p207_p7 }
  0x19   : > { %p251_p9 = scmp.lt.s32.totalorder (!%p208_p8), %s1062_s14, 1  ;;  %s214_s28 = sand.u32 (!%p208_p8), 1, %s1054_s12  }
  0x1a   : > { %211 = sbr.rel (%p208_p8) target bundleno = 304 (0x130), region = 51  ;;  %s822_s29 = sshll.u32 (!%p208_p8), %s214_s28, 6 }
  0x1b   : > { %s1143_s4 = scalar_lea.vmem (!%p208_p8), [#allocation2], %s822_s29 }
  0x1c   : > { %v1022_v8 = vld [vmem:[%s1143_s4 + $0x4] ss:$16 sps:$4 sm:$0xff] (!%p208_p8)   ;;  %v1020_v39 = vld [vmem:[%s1143_s4] ss:$16 sps:$4 sm:$0xff] (!%p208_p8)   ;;  %v1023_v42 = vld [vmem:[%s1143_s4 + $0x8] ss:$16 sps:$4 sm:$0xff] (!%p208_p8)  }
  0x1d   : > { %613 = vmatprep.mubr.bf16.mxu0 (!%p208_p8), %v1022_v8  ;;  %v1025_v43 = vld [vmem:[%s1143_s4 + $0xc] ss:$16 sps:$4 sm:$0xff] (!%p208_p8)   ;;  %v1026_v44 = vld [vmem:[%s1143_s4 + $0x24] ss:$16 sps:$4 sm:$0xff] (!%p208_p8)   ;;  %v1030_v46 = vld [vmem:[%s1143_s4 + $0x20] ss:$16 sps:$4 sm:$0xff] (!%p208_p8)  }
  0x1e   : > { %662 = vmatprep.mubr.bf16.mxu1 (!%p208_p8), %v1025_v43  ;;  %v1028_v45 = vld [vmem:[%s1143_s4 + $0x2c] ss:$16 sps:$4 sm:$0xff] (!%p208_p8)   ;;  %v1031_v47 = vld [vmem:[%s1143_s4 + $0x28] ss:$16 sps:$4 sm:$0xff] (!%p208_p8)  }
  0x21   : > { %s1224_s14 = smov (!%p251_p9, %s1062_s14), 1 }
  0x22   : > { %s875_s30 = sshll.u32 %s1224_s14, 8  ;;  %s258_s10 = scalar_lea.vmem %s1215_s2, %s1224_s14 }
  0x23   : > { %s1148_s7 = scalar_lea.vmem %s1214_s1, %s875_s30  ;;  %v827_v50 = vld [vmem:[%s258_s10] ss:$0 sm:$0xff]  ;;  %s876_s11 = sshll.u32 %s1224_s14, 4 }
  0x24   : > { %v988_v9 = vld [vmem:[%s1148_s7 + $0x40] sm:$0xff]   ;;  %v992_v13 = vld [vmem:[%s1148_s7 + $0x48] sm:$0xff]   ;;  %v996_v17 = vld [vmem:[%s1148_s7 + $0x50] sm:$0xff]   ;;  %s267_s19 = scalar_lea.vmem %s1216_s3, %s876_s11 }
  0x25   : > { %v989_v10 = vld [vmem:[%s1148_s7 + $0xc0] sm:$0xff]   ;;  %892 = vmatprep.subr.bf16.mxu0 %v988_v9  ;;  %v993_v14 = vld [vmem:[%s1148_s7 + $0xc8] sm:$0xff]   ;;  %v997_v18 = vld [vmem:[%s1148_s7 + $0xd0] sm:$0xff]  }
  0x26   : > { %v990_v11 = vld [vmem:[%s1148_s7] sm:$0xff]   ;;  %920 = vmatprep.subr.bf16.mxu1 %v989_v10  ;;  %v994_v15 = vld [vmem:[%s1148_s7 + $0x8] sm:$0xff]   ;;  %v998_v19 = vld [vmem:[%s1148_s7 + $0x10] sm:$0xff]  }
  0x27   : > { %v991_v12 = vld [vmem:[%s1148_s7 + $0x80] sm:$0xff]   ;;  %893 = vmatpush3.bf16.msra.mxu0 %v990_v11  ;;  %v995_v16 = vld [vmem:[%s1148_s7 + $0x88] sm:$0xff]   ;;  %v999_v20 = vld [vmem:[%s1148_s7 + $0x90] sm:$0xff]  }
  0x28   : > { %921 = vmatpush3.bf16.msra.mxu1 %v991_v12  ;;  %894 = vmatprep.subr.bf16.mxu0 %v992_v13  ;;  %v1000_v21 = vld [vmem:[%s1148_s7 + $0x58] sm:$0xff]   ;;  %v1004_v25 = vld [vmem:[%s1148_s7 + $0x60] sm:$0xff]   ;;  %v1008_v29 = vld [vmem:[%s1148_s7 + $0x68] sm:$0xff]  }
  0x29   : > { %922 = vmatprep.subr.bf16.mxu1 %v993_v14  ;;  %v1001_v22 = vld [vmem:[%s1148_s7 + $0xd8] sm:$0xff]   ;;  %v1005_v26 = vld [vmem:[%s1148_s7 + $0xe0] sm:$0xff]   ;;  %v1009_v30 = vld [vmem:[%s1148_s7 + $0xe8] sm:$0xff]  }
  0x2a   : > { %v1002_v23 = vld [vmem:[%s1148_s7 + $0x18] sm:$0xff]   ;;  %v1006_v27 = vld [vmem:[%s1148_s7 + $0x20] sm:$0xff]   ;;  %v1010_v31 = vld [vmem:[%s1148_s7 + $0x28] sm:$0xff]  }
  0x2b   : > { %895 = vmatpush3.bf16.msra.mxu0 %v994_v15  ;;  %v1003_v24 = vld [vmem:[%s1148_s7 + $0x98] sm:$0xff]   ;;  %v1007_v28 = vld [vmem:[%s1148_s7 + $0xa0] sm:$0xff]   ;;  %v1011_v32 = vld [vmem:[%s1148_s7 + $0xa8] sm:$0xff]  }
  0x2c   : > { %923 = vmatpush3.bf16.msra.mxu1 %v995_v16  ;;  %896 = vmatprep.subr.bf16.mxu0 %v996_v17  ;;  %v1012_v33 = vld [vmem:[%s1148_s7 + $0x70] sm:$0xff]   ;;  %v1016_v37 = vld [vmem:[%s1148_s7 + $0x78] sm:$0xff]  }
  0x2d   : > { %924 = vmatprep.subr.bf16.mxu1 %v997_v18  ;;  %v1013_v34 = vld [vmem:[%s1148_s7 + $0xf0] sm:$0xff]   ;;  %v1017_v38 = vld [vmem:[%s1148_s7 + $0xf8] sm:$0xff]  }
  0x2e   : > { %v1014_v35 = vld [vmem:[%s1148_s7 + $0x30] sm:$0xff]   ;;  %v1018_v40 = vld [vmem:[%s1148_s7 + $0x38] sm:$0xff]  }
  0x2f   : > { %897 = vmatpush3.bf16.msra.mxu0 %v998_v19  ;;  %v1015_v36 = vld [vmem:[%s1148_s7 + $0xb0] sm:$0xff]   ;;  %v1019_v41 = vld [vmem:[%s1148_s7 + $0xb8] sm:$0xff]  }
  0x30   : > { %925 = vmatpush3.bf16.msra.mxu1 %v999_v20  ;;  %898 = vmatprep.subr.bf16.mxu0 %v1000_v21 }
  0x31   : > { %926 = vmatprep.subr.bf16.mxu1 %v1001_v22 }
  0x33   : > { %899 = vmatpush3.bf16.msra.mxu0 %v1002_v23 }
  0x34   : > { %927 = vmatpush3.bf16.msra.mxu1 %v1003_v24  ;;  %900 = vmatprep.subr.bf16.mxu0 %v1004_v25 }
  0x35   : > { %928 = vmatprep.subr.bf16.mxu1 %v1005_v26 }
  0x37   : > { %901 = vmatpush3.bf16.msra.mxu0 %v1006_v27 }
  0x38   : > { %929 = vmatpush3.bf16.msra.mxu1 %v1007_v28  ;;  %902 = vmatprep.subr.bf16.mxu0 %v1008_v29 }
  0x39   : > { %930 = vmatprep.subr.bf16.mxu1 %v1009_v30 }
  0x3b   : > { %903 = vmatpush3.bf16.msra.mxu0 %v1010_v31 }
  0x3c   : > { %931 = vmatpush3.bf16.msra.mxu1 %v1011_v32  ;;  %904 = vmatprep.subr.bf16.mxu0 %v1012_v33 }
  0x3d   : > { %932 = vmatprep.subr.bf16.mxu1 %v1013_v34 }
  0x3f   : > { %905 = vmatpush3.bf16.msra.mxu0 %v1014_v35 }
  0x40   : > { %933 = vmatpush3.bf16.msra.mxu1 %v1015_v36  ;;  %906 = vmatprep.subr.bf16.mxu0 %v1016_v37 }
  0x41   : > { %934 = vmatprep.subr.bf16.mxu1 %v1017_v38 }
  0x43   : > { %907 = vmatpush3.bf16.msra.mxu0 %v1018_v40 }
  0x44   : > { %935 = vmatpush3.bf16.msra.mxu1 %v1019_v41 }
  0x46   : > { %614 = vmatmul.mubr.bf16.vlgmr.msra.gmra.mrb[0].mxu0 %v1020_v39 }
  0x47   : > { %663 = vmatmul.mubr.bf16.vlgmr.msra.gmra.mrb[0].mxu1 %v1023_v42  ;;  %621 = vmatprep.mubr.bf16.mxu0 %v1026_v44 }
  0x48   : > { %670 = vmatprep.mubr.bf16.mxu1 %v1028_v45 }
  0x4e   : > { %622 = vmatmul.mubr.bf16.gmra.mrb[4].mxu0 %v1030_v46 }
  0x4f   : > { %671 = vmatmul.mubr.bf16.gmra.mrb[4].mxu1 %v1031_v47 }
 0x119   : > { %v908_v48 = vpop.f32.mrb[0].mxu0 }
 0x11a   : > { %v936_v49 = vpop.f32.mrb[0].mxu1  ;;  %v909_v51 = vpop.f32.mrb[1].mxu0 }
 0x11b   : > { %v910_v52 = vadd.f32 %v909_v51, %v908_v48  ;;  %v937_v53 = vpop.f32.mrb[1].mxu1  ;;  %v911_v54 = vpop.f32.mrb[2].mxu0 }
 0x11c   : > { %v938_v55 = vadd.f32 %v937_v53, %v936_v49  ;;  %v939_v56 = vpop.f32.mrb[2].mxu1  ;;  %v912_v57 = vpop.f32.mrb[3].mxu0 }
 0x11d   : > { %v616_v58 = vadd.f32 %v910_v52, %v827_v50  ;;  %v913_v59 = vadd.f32 %v912_v57, %v911_v54  ;;  %v940_v60 = vpop.f32.mrb[3].mxu1 }
 0x11e   : > { %v941_v61 = vadd.f32 %v940_v60, %v939_v56 }
 0x11f   : > { %v665_v62 = vadd.f32 %v938_v55, %v616_v58  ;;  %v619_v63 = vadd.f32 %v913_v59, %v827_v50 }
 0x121   : > { %v668_v0 = vadd.f32 %v941_v61, %v619_v63  ;;  %v914_v1 = vpop.f32.mrb[4].mxu0  ;;  %v679_v4 = vmax.f32 %v665_v62, 0.0 }
 0x122   : > { %v942_v2 = vpop.f32.mrb[4].mxu1  ;;  %v915_v3 = vpop.f32.mrb[5].mxu0 }
 0x123   : > { %v680_v5 = vmax.f32 %v668_v0, 0.0  ;;  %v916_v6 = vadd.f32 %v915_v3, %v914_v1  ;;  %v943_v7 = vpop.f32.mrb[5].mxu1  ;;  %v917_v8 = vpop.f32.mrb[6].mxu0 }
 0x124   : > { %v944_v9 = vadd.f32 %v943_v7, %v942_v2  ;;  %v945_v10 = vpop.f32.mrb[6].mxu1  ;;  %v918_v11 = vpop.f32.mrb[7].mxu0 }
 0x125   : > { %v884_v12 = vpack.c.bf16 %v680_v5, %v679_v4  ;;  %v624_v13 = vadd.f32 %v916_v6, %v827_v50  ;;  %v919_v14 = vadd.f32 %v918_v11, %v917_v8  ;;  %v946_v15 = vpop.f32.mrb[7].mxu1 }
 0x126   : > { %v947_v16 = vadd.f32 %v946_v15, %v945_v10 }
 0x127   : > { %885 = vst [vmem:[%s267_s19] sm:$0xff] %v884_v12   ;;  %v673_v17 = vadd.f32 %v944_v9, %v624_v13  ;;  %v627_v18 = vadd.f32 %v919_v14, %v827_v50 }
 0x129   : > { %v676_v19 = vadd.f32 %v947_v16, %v627_v18  ;;  %v681_v20 = vmax.f32 %v673_v17, 0.0 }
 0x12b   : > { %v682_v21 = vmax.f32 %v676_v19, 0.0 }
 0x12d   : > { %v889_v22 = vpack.c.bf16 %v682_v21, %v681_v20 }
 0x12f   : > { %891 = vst [vmem:[%s267_s19 + $0x8] sm:$0xff] %v889_v22  }
 0x130 PF: > { %s13_s16 = sadd.s32 1, %s1070_s16   ;;  %s1217_s12 = smov %s1058_s13 }
 0x131   : > { %p10_p10 = scmp.ge.s32.totalorder %s13_s16, 4   ;;  %s1218_s13 = smov %s1127_s20 }
 0x132   : > { %s1219_s14 = smov %s1066_s15  ;;  %s1220_s15 = smov %s1222_s17 }
 0x133   :  { %12 = sbr.rel (!%p10_p10) target bundleno = 3 (0x3), region = 96 }

// kernel: rnd_forward.6
= control target key start
LH: loop header
LB: loop body
LE: loop exit
PB: predicated region body
PF: predicated region fallthrough
CT: control target
= control target key end

     0   :  { %s1066_s12 = smov 0   ;;  %s1068_s13 = smov 0   ;;  %s1156_s0 = inlined_call_operand.vmem [shape: bf16[2,16,576], index: 0, kind: input, shape index: {}]   ;;  %s1157_s1 = inlined_call_operand.vmem [shape: bf16[2,576,128], index: 1, kind: input, shape index: {}]   ;;  %s1158_s2 = inlined_call_operand.vmem [shape: f32[2,1,128], index: 2, kind: input, shape index: {}]   ;;  %s1159_s3 = inlined_call_operand.vmem [shape: bf16[2,16,128], index: 3, kind: output, shape index: {}]  }
   0x1   :  { %s1070_s14 = smov 0  }
   0x2 LB: > { %s25_s15 = sadd.s32 1, %s1038_s13  ;;  %p828_p0 = scmp.ge.s32.totalorder %s1042_s14, 1  ;;  %s1042_s14 = sphi %s1070_s14, %s13_s14   ;;  %s1038_s13 = sphi %s1068_s13, %s1161_s13   ;;  %s1034_s12 = sphi %s1066_s12, %s1160_s12  }
   0x3   : > { %p27_p1 = scmp.ge.s32.totalorder %s25_s15, 2  ;;  %p177_p2 = scmp.lt.s32.totalorder %s1042_s14, 3 }
   0x5   : > { %s1163_s15 = smov (%p27_p1, %s25_s15), 0  ;;  %p178_p3 = pnand %p828_p0, %p177_p2 }
   0x6   : > { %p219_p4 = scmp.lt.s32.totalorder (!%p178_p3), %s1034_s12, 1  ;;  %v1044_v33 = vmov (!%p178_p3), 0.0   ;;  %vm1045_vm0 = vmmov (!%p178_p3), 0   ;;  %vm574_vm1 = vcmask (!%p178_p3), 523264  }
   0x7   : > { %181 = sbr.rel (%p178_p3) target bundleno = 288 (0x120), region = 32 }
   0xe   : > { %s1165_s12 = smov (!%p219_p4, %s1034_s12), 1 }
   0xf   : > { %s950_s16 = smul.u32 288, %s1165_s12  ;;  %s236_s26 = scalar_lea.vmem %s1158_s2, %s1165_s12 }
  0x10   : > { %s949_s20 = smul.u32 40, %s1165_s12  ;;  %v833_v43 = vld [vmem:[%s236_s26] ss:$0 sm:$0xff]  ;;  %s880_s27 = sshll.u32 %s1165_s12, 3 }
  0x11   : > { %s1090_s19 = scalar_lea.vmem %s1157_s1, %s950_s16  ;;  %s245_s30 = scalar_lea.vmem %s1159_s3, %s880_s27 }
  0x12   : > { %v977_v0 = vld [vmem:[%s1090_s19 + $0x40] sm:$0xff]   ;;  %v981_v4 = vld [vmem:[%s1090_s19 + $0x48] sm:$0xff]   ;;  %v985_v8 = vld [vmem:[%s1090_s19 + $0x50] sm:$0xff]   ;;  %s1125_s23 = scalar_lea.vmem %s1156_s0, %s949_s20 }
  0x13   : > { %v978_v1 = vld [vmem:[%s1090_s19] sm:$0xff]   ;;  %888 = vmatprep.subr.bf16.mxu0 %v977_v0  ;;  %v982_v5 = vld [vmem:[%s1090_s19 + $0x8] sm:$0xff]   ;;  %v986_v9 = vld [vmem:[%s1090_s19 + $0x10] sm:$0xff]  }
  0x14   : > { %v979_v2 = vld [vmem:[%s1090_s19 + $0xc0] sm:$0xff]   ;;  %889 = vmatpush3.bf16.msra.mxu0 %v978_v1  ;;  %v983_v6 = vld [vmem:[%s1090_s19 + $0xc8] sm:$0xff]   ;;  %v987_v10 = vld [vmem:[%s1090_s19 + $0xd0] sm:$0xff]  }
  0x15   : > { %v980_v3 = vld [vmem:[%s1090_s19 + $0x80] sm:$0xff]   ;;  %910 = vmatprep.subr.bf16.mxu1 %v979_v2  ;;  %890 = vmatprep.subr.bf16.mxu0 %v981_v4  ;;  %v984_v7 = vld [vmem:[%s1090_s19 + $0x88] sm:$0xff]   ;;  %v988_v11 = vld [vmem:[%s1090_s19 + $0x90] sm:$0xff]  }
  0x16   : > { %911 = vmatpush3.bf16.msra.mxu1 %v980_v3  ;;  %v989_v12 = vld [vmem:[%s1090_s19 + $0x58] sm:$0xff]   ;;  %v993_v16 = vld [vmem:[%s1090_s19 + $0x60] sm:$0xff]   ;;  %v997_v20 = vld [vmem:[%s1090_s19 + $0x68] sm:$0xff]  }
  0x17   : > { %912 = vmatprep.subr.bf16.mxu1 %v983_v6  ;;  %v990_v13 = vld [vmem:[%s1090_s19 + $0x18] sm:$0xff]   ;;  %v994_v17 = vld [vmem:[%s1090_s19 + $0x20] sm:$0xff]   ;;  %v998_v21 = vld [vmem:[%s1090_s19 + $0x28] sm:$0xff]  }
  0x18   : > { %891 = vmatpush3.bf16.msra.mxu0 %v982_v5  ;;  %v991_v14 = vld [vmem:[%s1090_s19 + $0xd8] sm:$0xff]   ;;  %v995_v18 = vld [vmem:[%s1090_s19 + $0xe0] sm:$0xff]   ;;  %v999_v22 = vld [vmem:[%s1090_s19 + $0xe8] sm:$0xff]  }
  0x19   : > { %892 = vmatprep.subr.bf16.mxu0 %v985_v8  ;;  %v992_v15 = vld [vmem:[%s1090_s19 + $0x98] sm:$0xff]   ;;  %v996_v19 = vld [vmem:[%s1090_s19 + $0xa0] sm:$0xff]   ;;  %v1000_v23 = vld [vmem:[%s1090_s19 + $0xa8] sm:$0xff]  }
  0x1a   : > { %913 = vmatpush3.bf16.msra.mxu1 %v984_v7  ;;  %v1001_v24 = vld [vmem:[%s1090_s19 + $0x70] sm:$0xff]   ;;  %v1005_v28 = vld [vmem:[%s1090_s19 + $0x78] sm:$0xff]   ;;  %v1014_v36 = vld [vmem:[%s1125_s23 + $0xc] ss:$20 sps:$4 sm:$0xff]  }
  0x1b   : > { %914 = vmatprep.subr.bf16.mxu1 %v987_v10  ;;  %v1002_v25 = vld [vmem:[%s1090_s19 + $0x30] sm:$0xff]   ;;  %v1006_v29 = vld [vmem:[%s1090_s19 + $0x38] sm:$0xff]   ;;  %v1015_v37 = vld [vmem:[%s1090_s19 + $0x100] sm:$0xff]   ;;  %651 = vmatprep.mubr.bf16.mxu1 %v1014_v36 }
  0x1c   : > { %893 = vmatpush3.bf16.msra.mxu0 %v986_v9  ;;  %v1003_v26 = vld [vmem:[%s1090_s19 + $0xf0] sm:$0xff]   ;;  %v1007_v30 = vld [vmem:[%s1090_s19 + $0xf8] sm:$0xff]   ;;  %v1016_v38 = vld [vmem:[%s1090_s19 + $0x108] sm:$0xff]  }
  0x1d   : > { %894 = vmatprep.subr.bf16.mxu0 %v989_v12  ;;  %v1004_v27 = vld [vmem:[%s1090_s19 + $0xb0] sm:$0xff]   ;;  %v1010_v32 = vld [vmem:[%s1125_s23 + $0x4] ss:$20 sps:$4 sm:$0xff]   ;;  %v1012_v35 = vld [vmem:[%s1125_s23 + $0x8] ss:$20 sps:$4 sm:$0xff]  }
  0x1e   : > { %915 = vmatpush3.bf16.msra.mxu1 %v988_v11  ;;  %v1008_v31 = vld [vmem:[%s1125_s23] ss:$20 sps:$4 sm:$0xff]   ;;  %v1011_v34 = vld [vmem:[%s1090_s19 + $0xb8] sm:$0xff]   ;;  %610 = vmatprep.mubr.bf16.mxu0 %v1010_v32  ;;  %v1019_v41 = vld [vmem:[%s1125_s23 + $0x10] ss:$20 sps:$4 sm:$0xff]  }
  0x1f   : > { %916 = vmatprep.subr.bf16.mxu1 %v991_v14  ;;  %v1017_v39 = vld [vmem:[%s1090_s19 + $0x110] sm:$0xff]   ;;  %v1018_v40 = vld [vmem:[%s1090_s19 + $0x118] sm:$0xff]  }
  0x20   : > { %895 = vmatpush3.bf16.msra.mxu0 %v990_v13 }
  0x21   : > { %896 = vmatprep.subr.bf16.mxu0 %v993_v16 }
  0x22   : > { %917 = vmatpush3.bf16.msra.mxu1 %v992_v15 }
  0x23   : > { %918 = vmatprep.subr.bf16.mxu1 %v995_v18 }
  0x24   : > { %897 = vmatpush3.bf16.msra.mxu0 %v994_v17 }
  0x25   : > { %898 = vmatprep.subr.bf16.mxu0 %v997_v20 }
  0x26   : > { %919 = vmatpush3.bf16.msra.mxu1 %v996_v19 }
  0x27   : > { %920 = vmatprep.subr.bf16.mxu1 %v999_v22 }
  0x28   : > { %899 = vmatpush3.bf16.msra.mxu0 %v998_v21 }
  0x29   : > { %900 = vmatprep.subr.bf16.mxu0 %v1001_v24 }
  0x2a   : > { %921 = vmatpush3.bf16.msra.mxu1 %v1000_v23 }
  0x2b   : > { %922 = vmatprep.subr.bf16.mxu1 %v1003_v26 }
  0x2c   : > { %901 = vmatpush3.bf16.msra.mxu0 %v1002_v25 }
  0x2d   : > { %902 = vmatprep.subr.bf16.mxu0 %v1005_v28 }
  0x2e   : > { %923 = vmatpush3.bf16.msra.mxu1 %v1004_v27 }
  0x2f   : > { %924 = vmatprep.subr.bf16.mxu1 %v1007_v30 }
  0x30   : > { %903 = vmatpush3.bf16.msra.mxu0 %v1006_v29 }
  0x31   : > { %937 = vmatprep.subr.bf16.mxu0 %v1044_v33 }
  0x32   : > { %925 = vmatpush3.bf16.msra.mxu1 %v1011_v34 }
  0x33   : > { %611 = vmatmul.mubr.bf16.vlgmr.msra.gmra.mrb[0].mxu0 %v1008_v31 }
  0x34   : > { %945 = vmatprep.mubr.msk.bf16.mxu0 %vm1045_vm0, %v1044_v33  ;;  %938 = vmatpush3.bf16.msra.mxu0 %v1015_v37 }
  0x35   : > { %652 = vmatmul.mubr.bf16.vlgmr.msra.gmra.mrb[0].mxu1 %v1012_v35  ;;  %939 = vmatprep.subr.bf16.mxu0 %v1044_v33 }
  0x38   : > { %940 = vmatpush3.bf16.msra.mxu0 %v1016_v38 }
  0x39   : > { %941 = vmatprep.subr.bf16.mxu0 %v1044_v33 }
  0x3c   : > { %942 = vmatpush3.bf16.msra.mxu0 %v1017_v39 }
  0x3d   : > { %943 = vmatprep.subr.bf16.mxu0 %v1044_v33 }
  0x40   : > { %944 = vmatpush3.bf16.msra.mxu0 %v1018_v40 }
  0x43   : > { %946 = vmatmul.mubr.msk.bf16.vlgmr.msra.gmra.mrb[4].mxu0 %vm574_vm1, %v1019_v41 }
 0x106   : > { %v904_v42 = vpop.f32.mrb[0].mxu0 }
 0x107   : > { %v905_v44 = vpop.f32.mrb[1].mxu0 }
 0x108   : > { %v906_v45 = vadd.f32 %v905_v44, %v904_v42  ;;  %v907_v46 = vpop.f32.mrb[2].mxu0  ;;  %v926_v47 = vpop.f32.mrb[0].mxu1 }
 0x109   : > { %v908_v48 = vpop.f32.mrb[3].mxu0  ;;  %v927_v51 = vpop.f32.mrb[1].mxu1 }
 0x10a   : > { %v613_v49 = vadd.f32 %v906_v45, %v833_v43  ;;  %v909_v50 = vadd.f32 %v908_v48, %v907_v46  ;;  %v928_v52 = vadd.f32 %v927_v51, %v926_v47  ;;  %v929_v53 = vpop.f32.mrb[2].mxu1 }
 0x10b   : > { %v930_v55 = vpop.f32.mrb[3].mxu1 }
 0x10c   : > { %v616_v54 = vadd.f32 %v909_v50, %v833_v43  ;;  %v931_v56 = vadd.f32 %v930_v55, %v929_v53  ;;  %v654_v57 = vadd.f32 %v928_v52, %v613_v49 }
 0x10e   : > { %v657_v58 = vadd.f32 %v931_v56, %v616_v54 }
 0x116   : > { %v694_v59 = vpop.f32.mrb[4].mxu0 }
 0x117   : > { %v695_v60 = vadd.f32 %v694_v59, %v654_v57  ;;  %v947_v61 = vpop.f32.mrb[5].mxu0 }
 0x118   : > { %v697_v62 = vpop.f32.mrb[6].mxu0 }
 0x119   : > { %v698_v63 = vadd.f32 %v697_v62, %v657_v58  ;;  %v948_v0 = vpop.f32.mrb[7].mxu0  ;;  %v701_v1 = vmax.f32 %v695_v60, 0.0 }
 0x11b   : > { %v702_v2 = vmax.f32 %v698_v63, 0.0 }
 0x11d   : > { %v886_v3 = vpack.c.bf16 %v702_v2, %v701_v1 }
 0x11f   : > { %887 = vst [vmem:[%s245_s30] sm:$0xff] %v886_v3  }
 0x120 PF: > { %s13_s14 = sadd.s32 1, %s1042_s14   ;;  %s1160_s12 = smov %s1038_s13 }
 0x121   : > { %p10_p5 = scmp.ge.s32.totalorder %s13_s14, 4   ;;  %s1161_s13 = smov %s1163_s15 }
 0x123   :  { %12 = sbr.rel (!%p10_p5) target bundleno = 2 (0x2), region = 68 }

// kernel: rnd_forward.7
= control target key start
LH: loop header
LB: loop body
LE: loop exit
PB: predicated region body
PF: predicated region fallthrough
CT: control target
= control target key end

     0   :  { %s2160_s18 = smov 0   ;;  %s2162_s19 = smov 0   ;;  %s2392_s0 = inlined_call_operand.vmem [shape: bf16[2,16,64], index: 0, kind: input, shape index: {}]   ;;  %s2393_s1 = inlined_call_operand.vmem [shape: bf16[2,64,512], index: 1, kind: input, shape index: {}]   ;;  %s2394_s2 = inlined_call_operand.vmem [shape: f32[2,1,512], index: 2, kind: input, shape index: {}]   ;;  %s2395_s3 = inlined_call_operand.vmem [shape: bf16[2,512,512], index: 3, kind: input, shape index: {}]   ;;  %s2396_s4 = inlined_call_operand.vmem [shape: f32[2,1,512], index: 4, kind: input, shape index: {}]   ;;  %s2397_s5 = inlined_call_operand.vmem [shape: f32[2,16,512], index: 5, kind: output, shape index: {}]  }
   0x1   :  { %s2164_s20 = smov 0  }
   0x2 LB: > { %s27_s21 = sadd.s32 1, %s2123_s19  ;;  %p1683_p0 = scmp.ge.s32.totalorder %s2127_s20, 1  ;;  %s2127_s20 = sphi %s2164_s20, %s15_s20   ;;  %s2123_s19 = sphi %s2162_s19, %s2399_s19   ;;  %s2119_s18 = sphi %s2160_s18, %s2398_s18  }
   0x3   : > { %p29_p1 = scmp.ge.s32.totalorder %s27_s21, 2  ;;  %p246_p2 = scmp.lt.s32.totalorder %s2127_s20, 3 }
   0x5   : > { %s2401_s21 = smov (%p29_p1, %s27_s21), 0  ;;  %p247_p3 = pnand %p1683_p0, %p246_p2 }
   0x6   : > { %p302_p4 = scmp.lt.s32.totalorder (!%p247_p3), %s2119_s18, 1  ;;  %v2129_v0 = vmov (!%p247_p3), 0   ;;  %vm466_vm0 = vcmask (!%p247_p3), 523264  }
   0x7   : > { %250 = sbr.rel (%p247_p3) target bundleno = 538 (0x21a), region = 40  ;;  %502 = vmatprep.mubr.bf16.mxu0 (!%p247_p3), %v2129_v0  ;;  %545 = vmatprep.mubr.bf16.mxu1 (!%p247_p3), %v2129_v0 }
   0xe   : > { %s2403_s18 = smov (!%p302_p4, %s2119_s18), 1 }
   0xf   : > { %s1844_s22 = sshll.u32 %s2403_s18, 7  ;;  %s1843_s26 = sshll.u32 %s2403_s18, 3 }
  0x10   : > { %s2184_s25 = scalar_lea.vmem %s2393_s1, %s1844_s22  ;;  %s309_s29 = scalar_lea.vmem %s2392_s0, %s1843_s26 }
  0x11   : > { %v1888_v1 = vld [vmem:[%s2184_s25 + $0x4] ss:$16 sps:$4 sm:$0xff]   ;;  %v1890_v2 = vld [vmem:[%s2184_s25] ss:$16 sps:$4 sm:$0xff]   ;;  %s1845_s30 = sshll.u32 %s2403_s18, 10  ;;  %s1688_s9 = sshll.u32 %s2403_s18, 2 }
  0x12   : > { %470 = vmatprep.subr.bf16.mxu0 %v1888_v1  ;;  %v1891_v3 = vld [vmem:[%s2184_s25 + $0x24] ss:$16 sps:$4 sm:$0xff]   ;;  %v1893_v4 = vld [vmem:[%s2184_s25 + $0x20] ss:$16 sps:$4 sm:$0xff]   ;;  %v1901_v7 = vld [vmem:[%s2184_s25 + $0xc] ss:$16 sps:$4 sm:$0xff]   ;;  %s2204_s8 = scalar_lea.vmem %s2395_s3, %s1845_s30  ;;  %s319_s12 = scalar_lea.vmem %s2394_s2, %s1688_s9 }
  0x13   : > { %471 = vmatpush1.bf16.msra.mxu0 %v1890_v2  ;;  %v1894_v5 = vld [vmem:[%s2184_s25 + $0x44] ss:$16 sps:$4 sm:$0xff]   ;;  %v1896_v6 = vld [vmem:[%s2184_s25 + $0x40] ss:$16 sps:$4 sm:$0xff]   ;;  %v1903_v8 = vld [vmem:[%s2184_s25 + $0x8] ss:$16 sps:$4 sm:$0xff]   ;;  %513 = vmatprep.subr.bf16.mxu1 %v1901_v7  ;;  %s328_s15 = scalar_lea.vmem %s2396_s4, %s1688_s9 }
  0x14   : > { %472 = vmatprep.subr.bf16.mxu0 %v1891_v3  ;;  %v1897_v9 = vld [vmem:[%s2184_s25 + $0x64] ss:$16 sps:$4 sm:$0xff]   ;;  %v1904_v10 = vld [vmem:[%s2184_s25 + $0x2c] ss:$16 sps:$4 sm:$0xff]   ;;  %514 = vmatpush1.bf16.msra.mxu1 %v1903_v8  ;;  %v1906_v11 = vld [vmem:[%s2184_s25 + $0x28] ss:$16 sps:$4 sm:$0xff]  }
  0x15   : > { %v1899_v12 = vld [vmem:[%s2184_s25 + $0x60] ss:$16 sps:$4 sm:$0xff]   ;;  %515 = vmatprep.subr.bf16.mxu1 %v1904_v10  ;;  %v1907_v13 = vld [vmem:[%s2184_s25 + $0x4c] ss:$16 sps:$4 sm:$0xff]   ;;  %v1915_v14 = vld [vmem:[%s2204_s8 + $0x4] ss:$16 sps:$4 sm:$0xff]  }
  0x16   : > { %v1900_v15 = vld [vmem:[%s309_s29] sm:$0xff]   ;;  %v1909_v16 = vld [vmem:[%s2184_s25 + $0x48] ss:$16 sps:$4 sm:$0xff]   ;;  %v1910_v17 = vld [vmem:[%s2184_s25 + $0x6c] ss:$16 sps:$4 sm:$0xff]   ;;  %s1846_s16 = sshll.u32 %s2403_s18, 6 }
  0x17   : > { %473 = vmatpush1.bf16.msra.mxu0 %v1893_v4  ;;  %v1913_v18 = vld [vmem:[%s2204_s8] ss:$16 sps:$4 sm:$0xff]   ;;  %v1921_v19 = vld [vmem:[%s2204_s8 + $0x24] ss:$16 sps:$4 sm:$0xff]   ;;  %v1912_v20 = vld [vmem:[%s2184_s25 + $0x68] ss:$16 sps:$4 sm:$0xff]   ;;  %s338_s23 = scalar_lea.vmem %s2397_s5, %s1846_s16 }
  0x18   : > { %474 = vmatprep.subr.bf16.mxu0 %v1894_v5  ;;  %516 = vmatpush1.bf16.msra.mxu1 %v1906_v11  ;;  %v1918_v21 = vld [vmem:[%s2204_s8 + $0xc] ss:$16 sps:$4 sm:$0xff]   ;;  %v1919_v22 = vld [vmem:[%s2204_s8 + $0x20] ss:$16 sps:$4 sm:$0xff]   ;;  %v1927_v23 = vld [vmem:[%s2204_s8 + $0x44] ss:$16 sps:$4 sm:$0xff]  }
  0x19   : > { %517 = vmatprep.subr.bf16.mxu1 %v1907_v13  ;;  %v1916_v24 = vld [vmem:[%s2204_s8 + $0x8] ss:$16 sps:$4 sm:$0xff]   ;;  %v1924_v25 = vld [vmem:[%s2204_s8 + $0x2c] ss:$16 sps:$4 sm:$0xff]   ;;  %v1925_v26 = vld [vmem:[%s2204_s8 + $0x40] ss:$16 sps:$4 sm:$0xff]  }
  0x1a   : > { %v1933_v27 = vld [vmem:[%s2204_s8 + $0x64] ss:$16 sps:$4 sm:$0xff]   ;;  %v1922_v28 = vld [vmem:[%s2204_s8 + $0x28] ss:$16 sps:$4 sm:$0xff]   ;;  %v1930_v29 = vld [vmem:[%s2204_s8 + $0x4c] ss:$16 sps:$4 sm:$0xff]  }
  0x1b   : > { %475 = vmatpush1.bf16.msra.mxu0 %v1896_v6  ;;  %v1931_v30 = vld [vmem:[%s2204_s8 + $0x60] ss:$16 sps:$4 sm:$0xff]   ;;  %v1939_v31 = vld [vmem:[%s2204_s8 + $0x84] ss:$16 sps:$4 sm:$0xff]   ;;  %v1928_v32 = vld [vmem:[%s2204_s8 + $0x48] ss:$16 sps:$4 sm:$0xff]  }
  0x1c   : > { %476 = vmatprep.subr.bf16.mxu0 %v1897_v9  ;;  %518 = vmatpush1.bf16.msra.mxu1 %v1909_v16  ;;  %v1936_v33 = vld [vmem:[%s2204_s8 + $0x6c] ss:$16 sps:$4 sm:$0xff]   ;;  %v1937_v34 = vld [vmem:[%s2204_s8 + $0x80] ss:$16 sps:$4 sm:$0xff]   ;;  %v1945_v35 = vld [vmem:[%s2204_s8 + $0xa4] ss:$16 sps:$4 sm:$0xff]  }
  0x1d   : > { %519 = vmatprep.subr.bf16.mxu1 %v1910_v17  ;;  %v1934_v36 = vld [vmem:[%s2204_s8 + $0x68] ss:$16 sps:$4 sm:$0xff]   ;;  %v1942_v37 = vld [vmem:[%s2204_s8 + $0x8c] ss:$16 sps:$4 sm:$0xff]   ;;  %v1943_v38 = vld [vmem:[%s2204_s8 + $0xa0] ss:$16 sps:$4 sm:$0xff]  }
  0x1e   : > { %v1951_v39 = vld [vmem:[%s2204_s8 + $0xc4] ss:$16 sps:$4 sm:$0xff]   ;;  %v1940_v40 = vld [vmem:[%s2204_s8 + $0x88] ss:$16 sps:$4 sm:$0xff]   ;;  %v1948_v41 = vld [vmem:[%s2204_s8 + $0xac] ss:$16 sps:$4 sm:$0xff]  }
  0x1f   : > { %477 = vmatpush1.bf16.msra.mxu0 %v1899_v12  ;;  %v1949_v42 = vld [vmem:[%s2204_s8 + $0xc0] ss:$16 sps:$4 sm:$0xff]   ;;  %v1957_v43 = vld [vmem:[%s2204_s8 + $0xe4] ss:$16 sps:$4 sm:$0xff]   ;;  %v1946_v44 = vld [vmem:[%s2204_s8 + $0xa8] ss:$16 sps:$4 sm:$0xff]  }
  0x20   : > { %1358 = vmatprep.subr.bf16.mxu0 %v1915_v14  ;;  %520 = vmatpush1.bf16.msra.mxu1 %v1912_v20  ;;  %v1954_v45 = vld [vmem:[%s2204_s8 + $0xcc] ss:$16 sps:$4 sm:$0xff]   ;;  %v1955_v46 = vld [vmem:[%s2204_s8 + $0xe0] ss:$16 sps:$4 sm:$0xff]   ;;  %v1963_v47 = vld [vmem:[%s2204_s8 + $0x104] ss:$16 sps:$4 sm:$0xff]   ;;  %v361_v20 = vlaneseq }
  0x21   : > { %1444 = vmatprep.subr.bf16.mxu1 %v1918_v21  ;;  %v1952_v48 = vld [vmem:[%s2204_s8 + $0xc8] ss:$16 sps:$4 sm:$0xff]   ;;  %v1960_v49 = vld [vmem:[%s2204_s8 + $0xec] ss:$16 sps:$4 sm:$0xff]   ;;  %v1961_v50 = vld [vmem:[%s2204_s8 + $0x100] ss:$16 sps:$4 sm:$0xff]  }
  0x22   : > { %1711 = vmatmul.mubr.msk.bf16.vlgmr.msra.gmra.mrb[0].mxu0 %vm466_vm0, %v1900_v15  ;;  %v1958_v51 = vld [vmem:[%s2204_s8 + $0xe8] ss:$16 sps:$4 sm:$0xff]   ;;  %v1969_v52 = vld [vmem:[%s2204_s8 + $0x124] ss:$16 sps:$4 sm:$0xff]   ;;  %v1966_v53 = vld [vmem:[%s2204_s8 + $0x10c] ss:$16 sps:$4 sm:$0xff]  }
  0x23   : > { %1359 = vmatpush1.bf16.msra.mxu0 %v1913_v18  ;;  %1712 = vmatmul.mubr.msk.bf16.vlgmr.msra.gmra.mrb[0].mxu1 %vm466_vm0, %v1900_v15  ;;  %v1967_v54 = vld [vmem:[%s2204_s8 + $0x120] ss:$16 sps:$4 sm:$0xff]   ;;  %v1975_v55 = vld [vmem:[%s2204_s8 + $0x144] ss:$16 sps:$4 sm:$0xff]   ;;  %v1964_v56 = vld [vmem:[%s2204_s8 + $0x108] ss:$16 sps:$4 sm:$0xff]  }
  0x24   : > { %1360 = vmatprep.subr.bf16.mxu0 %v1921_v19  ;;  %1445 = vmatpush1.bf16.msra.mxu1 %v1916_v24  ;;  %v1972_v57 = vld [vmem:[%s2204_s8 + $0x12c] ss:$16 sps:$4 sm:$0xff]   ;;  %v1973_v58 = vld [vmem:[%s2204_s8 + $0x140] ss:$16 sps:$4 sm:$0xff]   ;;  %v1981_v59 = vld [vmem:[%s2204_s8 + $0x164] ss:$16 sps:$4 sm:$0xff]  }
  0x25   : > { %1446 = vmatprep.subr.bf16.mxu1 %v1924_v25  ;;  %v1970_v60 = vld [vmem:[%s2204_s8 + $0x128] ss:$16 sps:$4 sm:$0xff]   ;;  %v1978_v61 = vld [vmem:[%s2204_s8 + $0x14c] ss:$16 sps:$4 sm:$0xff]   ;;  %v1979_v62 = vld [vmem:[%s2204_s8 + $0x160] ss:$16 sps:$4 sm:$0xff]  }
  0x26   : > { %v1987_v63 = vld [vmem:[%s2204_s8 + $0x184] ss:$16 sps:$4 sm:$0xff]   ;;  %v1976_v0 = vld [vmem:[%s2204_s8 + $0x148] ss:$16 sps:$4 sm:$0xff]   ;;  %v1984_v1 = vld [vmem:[%s2204_s8 + $0x16c] ss:$16 sps:$4 sm:$0xff]  }
  0x27   : > { %1361 = vmatpush1.bf16.msra.mxu0 %v1919_v22  ;;  %v1985_v2 = vld [vmem:[%s2204_s8 + $0x180] ss:$16 sps:$4 sm:$0xff]   ;;  %v1993_v3 = vld [vmem:[%s2204_s8 + $0x1a4] ss:$16 sps:$4 sm:$0xff]   ;;  %v1982_v4 = vld [vmem:[%s2204_s8 + $0x168] ss:$16 sps:$4 sm:$0xff]  }
  0x28   : > { %1362 = vmatprep.subr.bf16.mxu0 %v1927_v23  ;;  %1447 = vmatpush1.bf16.msra.mxu1 %v1922_v28  ;;  %v1990_v5 = vld [vmem:[%s2204_s8 + $0x18c] ss:$16 sps:$4 sm:$0xff]   ;;  %v1991_v6 = vld [vmem:[%s2204_s8 + $0x1a0] ss:$16 sps:$4 sm:$0xff]   ;;  %v1988_v7 = vld [vmem:[%s2204_s8 + $0x188] ss:$16 sps:$4 sm:$0xff]  }
  0x29   : > { %1448 = vmatprep.subr.bf16.mxu1 %v1930_v29  ;;  %v1996_v8 = vld [vmem:[%s2204_s8 + $0x1ac] ss:$16 sps:$4 sm:$0xff]   ;;  %v1994_v9 = vld [vmem:[%s2204_s8 + $0x1a8] ss:$16 sps:$4 sm:$0xff]   ;;  %v1999_v10 = vld [vmem:[%s2204_s8 + $0x1c4] ss:$16 sps:$4 sm:$0xff]  }
  0x2a   : > { %v2002_v11 = vld [vmem:[%s2204_s8 + $0x1cc] ss:$16 sps:$4 sm:$0xff]   ;;  %v1997_v12 = vld [vmem:[%s2204_s8 + $0x1c0] ss:$16 sps:$4 sm:$0xff]   ;;  %v2000_v13 = vld [vmem:[%s2204_s8 + $0x1c8] ss:$16 sps:$4 sm:$0xff]  }
  0x2b   : > { %1363 = vmatpush1.bf16.msra.mxu0 %v1925_v26  ;;  %v2005_v14 = vld [vmem:[%s2204_s8 + $0x1e4] ss:$16 sps:$4 sm:$0xff]   ;;  %v2008_v15 = vld [vmem:[%s2204_s8 + $0x1ec] ss:$16 sps:$4 sm:$0xff]   ;;  %v2003_v16 = vld [vmem:[%s2204_s8 + $0x1e0] ss:$16 sps:$4 sm:$0xff]  }
  0x2c   : > { %1364 = vmatprep.subr.bf16.mxu0 %v1933_v27  ;;  %1449 = vmatpush1.bf16.msra.mxu1 %v1928_v32  ;;  %v2006_v17 = vld [vmem:[%s2204_s8 + $0x1e8] ss:$16 sps:$4 sm:$0xff]   ;;  %v2011_v18 = vld [vmem:[%s2204_s8 + $0x204] ss:$16 sps:$4 sm:$0xff]   ;;  %v2014_v19 = vld [vmem:[%s2204_s8 + $0x20c] ss:$16 sps:$4 sm:$0xff]  }
  0x2d   : > { %1450 = vmatprep.subr.bf16.mxu1 %v1936_v33  ;;  %v2281_v21 = vshrl.u32 %v361_v20, 7  ;;  %v359_v23 = vld [vmem:[%s319_s12] sm:$0xf]  ;;  %v2048_v20 = vld [vmem:[%s2204_s8 + $0x2c8] ss:$16 sps:$4 sm:$0xff]  }
  0x2f   : > { %1365 = vmatpush1.bf16.msra.mxu0 %v1931_v30  ;;  %v363_v22 = vsub.s32 0, %v2281_v21  ;;  %v367_v24 = vsub.s32 1, %v2281_v21  ;;  %v371_v28 = vsub.s32 2, %v2281_v21 }
  0x30   : > { %1366 = vmatprep.subr.bf16.mxu0 %v1939_v31  ;;  %1451 = vmatpush1.bf16.msra.mxu1 %v1934_v36  ;;  %v375_v31 = vsub.s32 3, %v2281_v21 }
  0x31   : > { %1452 = vmatprep.subr.bf16.mxu1 %v1942_v37  ;;  %v364_v25 = vrot.slane %v359_v23, %v363_v22  ;;  %v368_v26 = vrot.slane %v359_v23, %v367_v24  ;;  %v372_v37 = vrot.slane %v359_v23, %v371_v28 }
  0x33   : > { %1367 = vmatpush1.bf16.msra.mxu0 %v1937_v34 }
  0x34   : > { %1368 = vmatprep.subr.bf16.mxu0 %v1945_v35  ;;  %1453 = vmatpush1.bf16.msra.mxu1 %v1940_v40  ;;  %v376_v40 = vrot.slane %v359_v23, %v375_v31  ;;  %v2053_v23 = vld [vmem:[%s2204_s8 + $0x2e4] ss:$16 sps:$4 sm:$0xff]  }
  0x35   : > { %1454 = vmatprep.subr.bf16.mxu1 %v1948_v41 }
  0x37   : > { %1369 = vmatpush1.bf16.msra.mxu0 %v1943_v38 }
  0x38   : > { %1370 = vmatprep.subr.bf16.mxu0 %v1951_v39  ;;  %1455 = vmatpush1.bf16.msra.mxu1 %v1946_v44 }
  0x39   : > { %1456 = vmatprep.subr.bf16.mxu1 %v1954_v45 }
  0x3b   : > { %1371 = vmatpush1.bf16.msra.mxu0 %v1949_v42 }
  0x3c   : > { %1372 = vmatprep.subr.bf16.mxu0 %v1957_v43  ;;  %1457 = vmatpush1.bf16.msra.mxu1 %v1952_v48 }
  0x3d   : > { %1458 = vmatprep.subr.bf16.mxu1 %v1960_v49 }
  0x3f   : > { %1373 = vmatpush1.bf16.msra.mxu0 %v1955_v46  ;;  %v2009_v46 = vld [vmem:[%s2204_s8 + $0x200] ss:$16 sps:$4 sm:$0xff]  }
  0x40   : > { %1374 = vmatprep.subr.bf16.mxu0 %v1963_v47  ;;  %1459 = vmatpush1.bf16.msra.mxu1 %v1958_v51  ;;  %v2012_v47 = vld [vmem:[%s2204_s8 + $0x208] ss:$16 sps:$4 sm:$0xff]   ;;  %v2020_v51 = vld [vmem:[%s2204_s8 + $0x22c] ss:$16 sps:$4 sm:$0xff]  }
  0x41   : > { %1460 = vmatprep.subr.bf16.mxu1 %v1966_v53 }
  0x43   : > { %1375 = vmatpush1.bf16.msra.mxu0 %v1961_v50  ;;  %v2017_v50 = vld [vmem:[%s2204_s8 + $0x224] ss:$16 sps:$4 sm:$0xff]  }
  0x44   : > { %1376 = vmatprep.subr.bf16.mxu0 %v1969_v52  ;;  %1461 = vmatpush1.bf16.msra.mxu1 %v1964_v56 }
  0x45   : > { %1462 = vmatprep.subr.bf16.mxu1 %v1972_v57 }
  0x47   : > { %1377 = vmatpush1.bf16.msra.mxu0 %v1967_v54 }
  0x48   : > { %1378 = vmatprep.subr.bf16.mxu0 %v1975_v55  ;;  %1463 = vmatpush1.bf16.msra.mxu1 %v1970_v60  ;;  %v2018_v60 = vld [vmem:[%s2204_s8 + $0x228] ss:$16 sps:$4 sm:$0xff]  }
  0x49   : > { %1464 = vmatprep.subr.bf16.mxu1 %v1978_v61 }
  0x4b   : > { %1379 = vmatpush1.bf16.msra.mxu0 %v1973_v58 }
  0x4c   : > { %1380 = vmatprep.subr.bf16.mxu0 %v1981_v59  ;;  %1465 = vmatpush1.bf16.msra.mxu1 %v1976_v0  ;;  %v2015_v59 = vld [vmem:[%s2204_s8 + $0x220] ss:$16 sps:$4 sm:$0xff]  }
  0x4d   : > { %1466 = vmatprep.subr.bf16.mxu1 %v1984_v1 }
  0x4f   : > { %1381 = vmatpush1.bf16.msra.mxu0 %v1979_v62  ;;  %v2023_v62 = vld [vmem:[%s2204_s8 + $0x244] ss:$16 sps:$4 sm:$0xff]  }
  0x50   : > { %1382 = vmatprep.subr.bf16.mxu0 %v1987_v63  ;;  %1467 = vmatpush1.bf16.msra.mxu1 %v1982_v4  ;;  %v2026_v63 = vld [vmem:[%s2204_s8 + $0x24c] ss:$16 sps:$4 sm:$0xff]   ;;  %v2024_v4 = vld [vmem:[%s2204_s8 + $0x248] ss:$16 sps:$4 sm:$0xff]  }
  0x51   : > { %1468 = vmatprep.subr.bf16.mxu1 %v1990_v5  ;;  %v2029_v5 = vld [vmem:[%s2204_s8 + $0x264] ss:$16 sps:$4 sm:$0xff]  }
  0x53   : > { %1383 = vmatpush1.bf16.msra.mxu0 %v1985_v2 }
  0x54   : > { %1384 = vmatprep.subr.bf16.mxu0 %v1993_v3  ;;  %1469 = vmatpush1.bf16.msra.mxu1 %v1988_v7  ;;  %v2021_v3 = vld [vmem:[%s2204_s8 + $0x240] ss:$16 sps:$4 sm:$0xff]  }
  0x55   : > { %1470 = vmatprep.subr.bf16.mxu1 %v1996_v8  ;;  %v2027_v7 = vld [vmem:[%s2204_s8 + $0x260] ss:$16 sps:$4 sm:$0xff]   ;;  %v2030_v8 = vld [vmem:[%s2204_s8 + $0x268] ss:$16 sps:$4 sm:$0xff]  }
  0x57   : > { %1385 = vmatpush1.bf16.msra.mxu0 %v1991_v6  ;;  %v2032_v6 = vld [vmem:[%s2204_s8 + $0x26c] ss:$16 sps:$4 sm:$0xff]  }
  0x58   : > { %1471 = vmatpush1.bf16.msra.mxu1 %v1994_v9  ;;  %1386 = vmatprep.subr.bf16.mxu0 %v1999_v10  ;;  %v2035_v9 = vld [vmem:[%s2204_s8 + $0x284] ss:$16 sps:$4 sm:$0xff]   ;;  %v2038_v10 = vld [vmem:[%s2204_s8 + $0x28c] ss:$16 sps:$4 sm:$0xff]  }
  0x59   : > { %1472 = vmatprep.subr.bf16.mxu1 %v2002_v11  ;;  %v2033_v11 = vld [vmem:[%s2204_s8 + $0x280] ss:$16 sps:$4 sm:$0xff]  }
  0x5b   : > { %1387 = vmatpush1.bf16.msra.mxu0 %v1997_v12  ;;  %v2036_v12 = vld [vmem:[%s2204_s8 + $0x288] ss:$16 sps:$4 sm:$0xff]  }
  0x5c   : > { %1473 = vmatpush1.bf16.msra.mxu1 %v2000_v13  ;;  %1388 = vmatprep.subr.bf16.mxu0 %v2005_v14  ;;  %v2041_v13 = vld [vmem:[%s2204_s8 + $0x2a4] ss:$16 sps:$4 sm:$0xff]   ;;  %v2044_v14 = vld [vmem:[%s2204_s8 + $0x2ac] ss:$16 sps:$4 sm:$0xff]  }
  0x5d   : > { %1474 = vmatprep.subr.bf16.mxu1 %v2008_v15  ;;  %v2039_v15 = vld [vmem:[%s2204_s8 + $0x2a0] ss:$16 sps:$4 sm:$0xff]  }
  0x5f   : > { %1389 = vmatpush1.bf16.msra.mxu0 %v2003_v16  ;;  %v2042_v16 = vld [vmem:[%s2204_s8 + $0x2a8] ss:$16 sps:$4 sm:$0xff]  }
  0x60   : > { %1475 = vmatpush1.bf16.msra.mxu1 %v2006_v17  ;;  %1401 = vmatprep.subr.bf16.mxu0 %v2011_v18  ;;  %v2047_v17 = vld [vmem:[%s2204_s8 + $0x2c4] ss:$16 sps:$4 sm:$0xff]   ;;  %v2050_v18 = vld [vmem:[%s2204_s8 + $0x2cc] ss:$16 sps:$4 sm:$0xff]  }
  0x61   : > { %1487 = vmatprep.subr.bf16.mxu1 %v2014_v19  ;;  %v2045_v19 = vld [vmem:[%s2204_s8 + $0x2c0] ss:$16 sps:$4 sm:$0xff]  }
  0xf5   : > { %v504_v27 = vpop.f32.mrb[0].mxu0 }
  0xf6   : > { %v505_v29 = vadd.f32 %v504_v27, %v364_v25  ;;  %v506_v30 = vpop.f32.mrb[1].mxu0  ;;  %v547_v44 = vpop.f32.mrb[0].mxu1  ;;  %v2054_v27 = vld [vmem:[%s2204_s8 + $0x2e8] ss:$16 sps:$4 sm:$0xff]  }
  0xf7   : > { %v507_v32 = vadd.f32 %v506_v30, %v368_v26  ;;  %v508_v33 = vpop.f32.mrb[2].mxu0  ;;  %v548_v48 = vadd.f32 %v547_v44, %v372_v37  ;;  %v549_v49 = vpop.f32.mrb[1].mxu1  ;;  %v2062_v30 = vld [vmem:[%s2204_s8 + $0x30c] ss:$16 sps:$4 sm:$0xff]   ;;  %v2075_v44 = vld [vmem:[%s2204_s8 + $0x360] ss:$16 sps:$4 sm:$0xff]  }
  0xf8   : > { %v509_v34 = vadd.f32 %v508_v33, %v364_v25  ;;  %v510_v35 = vpop.f32.mrb[3].mxu0  ;;  %v556_v38 = vmax.f32 %v505_v29, 0.0  ;;  %v550_v52 = vadd.f32 %v549_v49, %v376_v40  ;;  %v551_v53 = vpop.f32.mrb[2].mxu1  ;;  %v2056_v25 = vld [vmem:[%s2204_s8 + $0x2ec] ss:$16 sps:$4 sm:$0xff]  }
  0xf9   : > { %v511_v36 = vadd.f32 %v510_v35, %v368_v26  ;;  %v557_v41 = vmax.f32 %v507_v32, 0.0  ;;  %v558_v54 = vmax.f32 %v548_v48, 0.0  ;;  %v552_v55 = vadd.f32 %v551_v53, %v372_v37  ;;  %v553_v56 = vpop.f32.mrb[3].mxu1  ;;  %v2051_v26 = vld [vmem:[%s2204_s8 + $0x2e0] ss:$16 sps:$4 sm:$0xff]  }
  0xfa   : > { %v560_v39 = vmax.f32 %v509_v34, 0.0  ;;  %v559_v57 = vmax.f32 %v550_v52, 0.0  ;;  %v554_v58 = vadd.f32 %v553_v56, %v376_v40  ;;  %v2059_v29 = vld [vmem:[%s2204_s8 + $0x304] ss:$16 sps:$4 sm:$0xff]   ;;  %v2057_v32 = vld [vmem:[%s2204_s8 + $0x300] ss:$16 sps:$4 sm:$0xff]  }
  0xfb   : > { %v561_v42 = vmax.f32 %v511_v36, 0.0  ;;  %v562_v61 = vmax.f32 %v552_v55, 0.0  ;;  %v2060_v33 = vld [vmem:[%s2204_s8 + $0x308] ss:$16 sps:$4 sm:$0xff]   ;;  %v2065_v34 = vld [vmem:[%s2204_s8 + $0x324] ss:$16 sps:$4 sm:$0xff]  }
  0xfc   : > { %v564_v43 = vpack.c.bf16 %v560_v39, %v556_v38  ;;  %v563_v0 = vmax.f32 %v554_v58, 0.0  ;;  %v2068_v35 = vld [vmem:[%s2204_s8 + $0x32c] ss:$16 sps:$4 sm:$0xff]   ;;  %v2063_v36 = vld [vmem:[%s2204_s8 + $0x320] ss:$16 sps:$4 sm:$0xff]  }
  0xfd   : > { %v565_v45 = vpack.c.bf16 %v561_v42, %v557_v41  ;;  %v2308_v1 = vpack.c.bf16 %v562_v61, %v558_v54  ;;  %v2066_v37 = vld [vmem:[%s2204_s8 + $0x328] ss:$16 sps:$4 sm:$0xff]   ;;  %v2071_v38 = vld [vmem:[%s2204_s8 + $0x344] ss:$16 sps:$4 sm:$0xff]   ;;  %v2074_v39 = vld [vmem:[%s2204_s8 + $0x34c] ss:$16 sps:$4 sm:$0xff]  }
  0xfe   : > { %v567_v2 = vpack.c.bf16 %v563_v0, %v559_v57  ;;  %v2069_v40 = vld [vmem:[%s2204_s8 + $0x340] ss:$16 sps:$4 sm:$0xff]   ;;  %v2072_v41 = vld [vmem:[%s2204_s8 + $0x348] ss:$16 sps:$4 sm:$0xff]   ;;  %v2077_v42 = vld [vmem:[%s2204_s8 + $0x364] ss:$16 sps:$4 sm:$0xff]  }
  0xff   : > { %1390 = vmatprep.mubr.bf16.mxu0 %v565_v45  ;;  %1476 = vmatprep.mubr.bf16.mxu1 %v565_v45  ;;  %v2078_v45 = vld [vmem:[%s2204_s8 + $0x368] ss:$16 sps:$4 sm:$0xff]   ;;  %v2081_v48 = vld [vmem:[%s2204_s8 + $0x380] ss:$16 sps:$4 sm:$0xff]   ;;  %v2095_v54 = vld [vmem:[%s2204_s8 + $0x3c4] ss:$16 sps:$4 sm:$0xff]  }
 0x100   : > { %1391 = vmatmul.mubr.bf16.vlgmr.msra.gmra.mrb[4].mxu0 %v564_v43  ;;  %1477 = vmatmul.mubr.bf16.vlgmr.msra.gmra.mrb[4].mxu1 %v564_v43  ;;  %v2080_v43 = vld [vmem:[%s2204_s8 + $0x36c] ss:$16 sps:$4 sm:$0xff]   ;;  %v2084_v49 = vld [vmem:[%s2204_s8 + $0x388] ss:$16 sps:$4 sm:$0xff]   ;;  %v2087_v52 = vld [vmem:[%s2204_s8 + $0x3a0] ss:$16 sps:$4 sm:$0xff]  }
 0x101   : > { %1402 = vmatpush1.bf16.msra.mxu0 %v2009_v46  ;;  %1488 = vmatpush1.bf16.msra.mxu1 %v2012_v47  ;;  %v2083_v46 = vld [vmem:[%s2204_s8 + $0x384] ss:$16 sps:$4 sm:$0xff]   ;;  %v2086_v47 = vld [vmem:[%s2204_s8 + $0x38c] ss:$16 sps:$4 sm:$0xff]   ;;  %v2090_v53 = vld [vmem:[%s2204_s8 + $0x3a8] ss:$16 sps:$4 sm:$0xff]  }
 0x102   : > { %1403 = vmatprep.subr.bf16.mxu0 %v2017_v50  ;;  %1489 = vmatprep.subr.bf16.mxu1 %v2020_v51  ;;  %v2089_v50 = vld [vmem:[%s2204_s8 + $0x3a4] ss:$16 sps:$4 sm:$0xff]   ;;  %v2092_v51 = vld [vmem:[%s2204_s8 + $0x3ac] ss:$16 sps:$4 sm:$0xff]   ;;  %v2093_v56 = vld [vmem:[%s2204_s8 + $0x3c0] ss:$16 sps:$4 sm:$0xff]  }
 0x103   : > { %1433 = vmatprep.mubr.bf16.mxu0 %v567_v2  ;;  %1519 = vmatprep.mubr.bf16.mxu1 %v567_v2  ;;  %v2098_v55 = vld [vmem:[%s2204_s8 + $0x3cc] ss:$16 sps:$4 sm:$0xff]   ;;  %v2096_v57 = vld [vmem:[%s2204_s8 + $0x3c8] ss:$16 sps:$4 sm:$0xff]   ;;  %v2101_v58 = vld [vmem:[%s2204_s8 + $0x3e4] ss:$16 sps:$4 sm:$0xff]  }
 0x104   : > { %v2102_v61 = vld [vmem:[%s2204_s8 + $0x3e8] ss:$16 sps:$4 sm:$0xff]  }
 0x105   : > { %1404 = vmatpush1.bf16.msra.mxu0 %v2015_v59  ;;  %1490 = vmatpush1.bf16.msra.mxu1 %v2018_v60  ;;  %v2104_v59 = vld [vmem:[%s2204_s8 + $0x3ec] ss:$16 sps:$4 sm:$0xff]   ;;  %v2099_v60 = vld [vmem:[%s2204_s8 + $0x3e0] ss:$16 sps:$4 sm:$0xff]  }
 0x106   : > { %1405 = vmatprep.subr.bf16.mxu0 %v2023_v62  ;;  %1491 = vmatprep.subr.bf16.mxu1 %v2026_v63  ;;  %v696_v62 = vld [vmem:[%s328_s15] sm:$0xf] }
 0x107   : > { %v701_v63 = vrot.slane %v696_v62, %v363_v22  ;;  %v709_v0 = vrot.slane %v696_v62, %v371_v28  ;;  %v705_v2 = vrot.slane %v696_v62, %v367_v24 }
 0x109   : > { %1406 = vmatpush1.bf16.msra.mxu0 %v2021_v3  ;;  %1492 = vmatpush1.bf16.msra.mxu1 %v2024_v4  ;;  %v713_v3 = vrot.slane %v696_v62, %v375_v31 }
 0x10a   : > { %1407 = vmatprep.subr.bf16.mxu0 %v2029_v5  ;;  %1493 = vmatprep.subr.bf16.mxu1 %v2032_v6 }
 0x10d   : > { %1408 = vmatpush1.bf16.msra.mxu0 %v2027_v7  ;;  %1494 = vmatpush1.bf16.msra.mxu1 %v2030_v8 }
 0x10e   : > { %1409 = vmatprep.subr.bf16.mxu0 %v2035_v9  ;;  %1495 = vmatprep.subr.bf16.mxu1 %v2038_v10 }
 0x111   : > { %1410 = vmatpush1.bf16.msra.mxu0 %v2033_v11  ;;  %1496 = vmatpush1.bf16.msra.mxu1 %v2036_v12 }
 0x112   : > { %1411 = vmatprep.subr.bf16.mxu0 %v2041_v13  ;;  %1497 = vmatprep.subr.bf16.mxu1 %v2044_v14 }
 0x115   : > { %1412 = vmatpush1.bf16.msra.mxu0 %v2039_v15  ;;  %1498 = vmatpush1.bf16.msra.mxu1 %v2042_v16 }
 0x116   : > { %1413 = vmatprep.subr.bf16.mxu0 %v2047_v17  ;;  %1499 = vmatprep.subr.bf16.mxu1 %v2050_v18 }
 0x119   : > { %1414 = vmatpush1.bf16.msra.mxu0 %v2045_v19  ;;  %1500 = vmatpush1.bf16.msra.mxu1 %v2048_v20 }
 0x11a   : > { %1415 = vmatprep.subr.bf16.mxu0 %v2053_v23  ;;  %1501 = vmatprep.subr.bf16.mxu1 %v2056_v25 }
 0x11d   : > { %1416 = vmatpush1.bf16.msra.mxu0 %v2051_v26  ;;  %1502 = vmatpush1.bf16.msra.mxu1 %v2054_v27 }
 0x11e   : > { %1417 = vmatprep.subr.bf16.mxu0 %v2059_v29  ;;  %1503 = vmatprep.subr.bf16.mxu1 %v2062_v30 }
 0x121   : > { %1418 = vmatpush1.bf16.msra.mxu0 %v2057_v32  ;;  %1504 = vmatpush1.bf16.msra.mxu1 %v2060_v33 }
 0x122   : > { %1419 = vmatprep.subr.bf16.mxu0 %v2065_v34  ;;  %1505 = vmatprep.subr.bf16.mxu1 %v2068_v35 }
 0x125   : > { %1420 = vmatpush1.bf16.msra.mxu0 %v2063_v36  ;;  %1506 = vmatpush1.bf16.msra.mxu1 %v2066_v37 }
 0x126   : > { %1421 = vmatprep.subr.bf16.mxu0 %v2071_v38  ;;  %1507 = vmatprep.subr.bf16.mxu1 %v2074_v39 }
 0x129   : > { %1422 = vmatpush1.bf16.msra.mxu0 %v2069_v40  ;;  %1508 = vmatpush1.bf16.msra.mxu1 %v2072_v41 }
 0x12a   : > { %1423 = vmatprep.subr.bf16.mxu0 %v2077_v42  ;;  %1509 = vmatprep.subr.bf16.mxu1 %v2080_v43 }
 0x12d   : > { %1424 = vmatpush1.bf16.msra.mxu0 %v2075_v44  ;;  %1510 = vmatpush1.bf16.msra.mxu1 %v2078_v45 }
 0x12e   : > { %1425 = vmatprep.subr.bf16.mxu0 %v2083_v46  ;;  %1511 = vmatprep.subr.bf16.mxu1 %v2086_v47 }
 0x131   : > { %1426 = vmatpush1.bf16.msra.mxu0 %v2081_v48  ;;  %1512 = vmatpush1.bf16.msra.mxu1 %v2084_v49 }
 0x132   : > { %1427 = vmatprep.subr.bf16.mxu0 %v2089_v50  ;;  %1513 = vmatprep.subr.bf16.mxu1 %v2092_v51 }
 0x135   : > { %1428 = vmatpush1.bf16.msra.mxu0 %v2087_v52  ;;  %1514 = vmatpush1.bf16.msra.mxu1 %v2090_v53 }
 0x136   : > { %1429 = vmatprep.subr.bf16.mxu0 %v2095_v54  ;;  %1515 = vmatprep.subr.bf16.mxu1 %v2098_v55 }
 0x139   : > { %1430 = vmatpush1.bf16.msra.mxu0 %v2093_v56  ;;  %1516 = vmatpush1.bf16.msra.mxu1 %v2096_v57 }
 0x13a   : > { %1431 = vmatprep.subr.bf16.mxu0 %v2101_v58  ;;  %1517 = vmatprep.subr.bf16.mxu1 %v2104_v59 }
 0x13d   : > { %1432 = vmatpush1.bf16.msra.mxu0 %v2099_v60  ;;  %1518 = vmatpush1.bf16.msra.mxu1 %v2102_v61 }
 0x140   : > { %1434 = vmatmul.mubr.bf16.vlgmr.msra.gmra.mrb[4].mxu0 %v2308_v1  ;;  %1520 = vmatmul.mubr.bf16.vlgmr.msra.gmra.mrb[4].mxu1 %v2308_v1 }
 0x213   : > { %v1435_v1 = vpop.f32.mrb[4].mxu0  ;;  %v1521_v4 = vpop.f32.mrb[4].mxu1 }
 0x214   : > { %v1847_v5 = vadd.f32 %v1435_v1, %v701_v63  ;;  %v1851_v6 = vadd.f32 %v1521_v4, %v709_v0  ;;  %v1437_v7 = vpop.f32.mrb[5].mxu0  ;;  %v1523_v8 = vpop.f32.mrb[5].mxu1 }
 0x215   : > { %v1848_v22 = vadd.f32 %v1437_v7, %v705_v2  ;;  %v1852_v9 = vadd.f32 %v1523_v8, %v713_v3  ;;  %v1439_v10 = vpop.f32.mrb[6].mxu0  ;;  %v1525_v28 = vpop.f32.mrb[6].mxu1 }
 0x216   : > { %1530 = vst [vmem:[%s338_s23] sm:$0xff] %v1847_v5  ;;  %1532 = vst [vmem:[%s338_s23 + $0x10] sm:$0xff] %v1851_v6  ;;  %v1849_v24 = vadd.f32 %v1439_v10, %v701_v63  ;;  %v1853_v11 = vadd.f32 %v1525_v28, %v709_v0  ;;  %v1441_v21 = vpop.f32.mrb[7].mxu0  ;;  %v1527_v31 = vpop.f32.mrb[7].mxu1 }
 0x217   : > { %1531 = vst [vmem:[%s338_s23 + $0x8] sm:$0xff] %v1848_v22  ;;  %1533 = vst [vmem:[%s338_s23 + $0x18] sm:$0xff] %v1852_v9  ;;  %v1850_v12 = vadd.f32 %v1441_v21, %v705_v2  ;;  %v1854_v13 = vadd.f32 %v1527_v31, %v713_v3 }
 0x218   : > { %1534 = vst [vmem:[%s338_s23 + $0x20] sm:$0xff] %v1849_v24  ;;  %1536 = vst [vmem:[%s338_s23 + $0x30] sm:$0xff] %v1853_v11 }
 0x219   : > { %1535 = vst [vmem:[%s338_s23 + $0x28] sm:$0xff] %v1850_v12  ;;  %1537 = vst [vmem:[%s338_s23 + $0x38] sm:$0xff] %v1854_v13 }
 0x21a PF: > { %s15_s20 = sadd.s32 1, %s2127_s20   ;;  %s2398_s18 = smov %s2123_s19 }
 0x21b   : > { %p12_p5 = scmp.ge.s32.totalorder %s15_s20, 4   ;;  %s2399_s19 = smov %s2401_s21 }
 0x21d   :  { %14 = sbr.rel (!%p12_p5) target bundleno = 2 (0x2), region = 82 }

</bundles_post_ra>
